<compile_context>
chip_gen: v7x
topology: tpu7x:2x2x1
jax: 0.10.0
libtpu: 0.0.40
codegen_flags: <defaults>
</compile_context>

<pallas_src>
import math

import jax
import jax.numpy as jnp
from jax.experimental import pallas as pl
from jax.experimental.pallas import tpu as pltpu


def _masked_lstm_kernel(x_ref, m_ref, wih_ref, whh_ref, b_ref, wfc_ref, bfc_ref,
                        out_ref, gx_scr, mh_scr):
    # x_ref   : (T*Bp, D)     f32   time-major raw features (unmasked)
    # m_ref   : (T, Bp, 1)    f32   keep-mask
    # wih_ref : (D, 4*Hp)     bf16  gate columns [i|f|g|o], zero-padded per gate
    # whh_ref : (Hp, 4*Hp)    bf16
    # b_ref   : (1, 4*Hp)     f32   b_ih + b_hh (gate-padded, zeros in pad lanes)
    # wfc_ref : (O, Hp)       f32
    # bfc_ref : (1, O)        f32
    # out_ref : (Bp, O)       f32
    # gx_scr  : (T, Bp, 4*Hp) f32   input projection (+bias) for all timesteps
    # mh_scr  : (T, Bp, Hp)   f32   keep-mask pre-broadcast to the state width
    T, Bp, _ = m_ref.shape
    D = x_ref.shape[1]
    Hp = whh_ref.shape[0]
    O = wfc_ref.shape[0]

    # --- one-time prologue (off the serial recurrence path) -------------------------
    # PyTorch semantics: x_t := x_t * m_t before the cell. m is {0,1} so gating before
    # the bf16 cast is exact. One big MXU call covers every timestep's input projection
    # with the bias folded in.
    m_rows = m_ref[...].reshape(T * Bp, 1)                         # (T*Bp, 1)
    xm = (x_ref[...] * m_rows).astype(jnp.bfloat16)                # (T*Bp, D) bf16
    gx = jnp.dot(xm, wih_ref[...], preferred_element_type=jnp.float32) + b_ref[...]
    gx_scr[...] = gx.reshape(T, Bp, 4 * Hp)

    # Pre-broadcast the mask to (T, Bp, Hp) so the recurrent loop does no lane-broadcasts.
    mh_scr[...] = jnp.broadcast_to(m_ref[...], (T, Bp, Hp))

    whh = whh_ref[...]                                             # loop-invariant

    # --- serial recurrence -----------------------------------------------------------
    def step(t, carry):
        h, c = carry                                               # f32 (Bp, Hp)
        gates = gx_scr[t] + jnp.dot(h.astype(jnp.bfloat16), whh,
                                    preferred_element_type=jnp.float32)
        # 128-lane aligned gate slices (Hp is a multiple of 128)
        i_g = jax.nn.sigmoid(gates[:, 0 * Hp:1 * Hp])
        f_g = jax.nn.sigmoid(gates[:, 1 * Hp:2 * Hp])
        g_g = jnp.tanh(gates[:, 2 * Hp:3 * Hp])
        o_g = jax.nn.sigmoid(gates[:, 3 * Hp:4 * Hp])
        c_new = f_g * c + i_g * g_g
        h_new = o_g * jnp.tanh(c_new)
        m_t = mh_scr[t]                                            # (Bp, Hp), pre-broadcast
        h = h + m_t * (h_new - h)                                  # == m*new + (1-m)*old
        c = c + m_t * (c_new - c)
        return (h, c)

    h0 = jnp.zeros((Bp, Hp), jnp.float32)
    h_last, _ = jax.lax.fori_loop(0, T, step, (h0, h0), unroll=True)

    # --- epilogue: dropout is Identity (use_dropout=False default); fc + relu ---------
    if O == 1:
        # VPU multiply + XLU lane reduction instead of an N=1 MXU matmul.
        y = jnp.sum(h_last * wfc_ref[...], axis=-1, keepdims=True) + bfc_ref[...]
    else:
        y = jax.lax.dot_general(h_last, wfc_ref[...],
                                dimension_numbers=(((1,), (1,)), ((), ())),
                                preferred_element_type=jnp.float32) + bfc_ref[...]
    out_ref[...] = jnp.maximum(y, 0.0).astype(out_ref.dtype)


def masked_lstm_forward(x, mask, params):
    """x: (B, T, D) batch-first features; mask: (B, T) keep-mask. Returns (B, O) f32."""
    B, T, D = x.shape
    Hp = params["w_hh_t"].shape[0]
    O = params["w_fc"].shape[0]
    Bp = max(8, -(-B // 8) * 8)                        # sublane-aligned batch

    # Host side is layout plumbing only (pad + time-major copy); mask gating, bf16 cast
    # and all math happen inside the kernel.
    xp = jnp.pad(x.astype(jnp.float32), ((0, Bp - B), (0, 0), (0, 0)))
    x_tm = jnp.transpose(xp, (1, 0, 2)).reshape(T * Bp, D)                 # (T*Bp, D) f32
    mp = jnp.pad(mask.astype(jnp.float32), ((0, Bp - B), (0, 0)))
    m_tm = jnp.transpose(mp, (1, 0))[:, :, None]                           # (T, Bp, 1) f32

    out = pl.pallas_call(
        _masked_lstm_kernel,
        out_shape=jax.ShapeDtypeStruct((Bp, O), jnp.float32),
        grid_spec=pltpu.PrefetchScalarGridSpec(
            num_scalar_prefetch=0,
            grid=(1,),                                  # single invocation; time loops in-kernel
            in_specs=[
                pl.BlockSpec((T * Bp, D), lambda i: (0, 0)),       # raw x (time-major)
                pl.BlockSpec((T, Bp, 1), lambda i: (0, 0, 0)),     # mask
                pl.BlockSpec((D, 4 * Hp), lambda i: (0, 0)),       # W_ih^T
                pl.BlockSpec((Hp, 4 * Hp), lambda i: (0, 0)),      # W_hh^T
                pl.BlockSpec((1, 4 * Hp), lambda i: (0, 0)),       # b_ih + b_hh
                pl.BlockSpec((O, Hp), lambda i: (0, 0)),           # W_fc
                pl.BlockSpec((1, O), lambda i: (0, 0)),            # b_fc
            ],
            out_specs=pl.BlockSpec((Bp, O), lambda i: (0, 0)),
            scratch_shapes=[
                pltpu.VMEM((T, Bp, 4 * Hp), jnp.float32),          # gx (all timesteps)
                pltpu.VMEM((T, Bp, Hp), jnp.float32),              # mask pre-broadcast
            ],
        ),
        compiler_params=pltpu.CompilerParams(dimension_semantics=("arbitrary",)),
    )(x_tm, m_tm, params["w_ih_t"], params["w_hh_t"], params["b"],
      params["w_fc"], params["b_fc"])
    return out[:B]


def init_params(key, input_size=30, hidden_size=64, output_size=1):
    """Xavier-normal weights / 0.1 biases (mirrors MaskedLSTM._init_weights), packed into
    the transposed, gate-padded layout the kernel consumes (each gate padded H -> Hp)."""
    k_ih, k_hh, k_fc = jax.random.split(key, 3)
    H, D, O = hidden_size, input_size, output_size
    Hp = ((H + 127) // 128) * 128

    def xavier_normal(k, shape):             # PyTorch 2-D (out, in) convention
        fan_out, fan_in = shape
        std = math.sqrt(2.0 / (fan_in + fan_out))
        return std * jax.random.normal(k, shape, dtype=jnp.float32)

    w_ih = xavier_normal(k_ih, (4 * H, D))   # rows ordered [i|f|g|o]
    w_hh = xavier_normal(k_hh, (4 * H, H))
    w_fc = xavier_normal(k_fc, (O, H))
    b = jnp.full((4 * H,), 0.2, jnp.float32)           # b_ih + b_hh, each 0.1

    def pad_gates_lastdim(w4h):                         # (..., 4H) -> (..., 4Hp), zeros per gate
        pads = [(0, 0)] * (w4h.ndim - 1) + [(0, Hp - H)]
        blocks = [jnp.pad(w4h[..., k * H:(k + 1) * H], pads) for k in range(4)]
        return jnp.concatenate(blocks, axis=-1)

    w_ih_t = pad_gates_lastdim(w_ih.T)                                      # (D, 4Hp)
    w_hh_t = pad_gates_lastdim(jnp.pad(w_hh.T, ((0, Hp - H), (0, 0))))      # (Hp, 4Hp)
    b_p = pad_gates_lastdim(b.reshape(1, 4 * H))                            # (1, 4Hp)
    w_fc_p = jnp.pad(w_fc, ((0, 0), (0, Hp - H)))                           # (O, Hp) f32

    # TODO(synk): nn.Dropout path (use_dropout=True) not implemented; module default is Identity.
    return {
        "w_ih_t": w_ih_t.astype(jnp.bfloat16),
        "w_hh_t": w_hh_t.astype(jnp.bfloat16),
        "b": b_p,                                       # f32
        "w_fc": w_fc_p,                                 # f32 (consumed on the VPU path)
        "b_fc": jnp.full((1, O), 0.1, jnp.float32),
    }


def _reference_forward(x, mask, params):
    """Pure-JAX (lax.scan) MaskedLSTM reference with the same precision policy."""
    Hp = params["w_hh_t"].shape[0]
    B = x.shape[0]
    wih, whh = params["w_ih_t"], params["w_hh_t"]
    b, wfc, bfc = params["b"], params["w_fc"], params["b_fc"]

    xm = (x.astype(jnp.float32) * mask.astype(jnp.float32)[..., None]).astype(jnp.bfloat16)
    xt = jnp.transpose(xm, (1, 0, 2))                                   # (T, B, D)
    mt = jnp.transpose(mask.astype(jnp.float32), (1, 0))[:, :, None]    # (T, B, 1)

    def step(carry, xs):
        x_t, m_t = xs
        h, c = carry
        g = (jnp.dot(x_t, wih, preferred_element_type=jnp.float32)
             + jnp.dot(h.astype(jnp.bfloat16), whh, preferred_element_type=jnp.float32)
             + b)
        i = jax.nn.sigmoid(g[:, 0 * Hp:1 * Hp])
        f = jax.nn.sigmoid(g[:, 1 * Hp:2 * Hp])
        gg = jnp.tanh(g[:, 2 * Hp:3 * Hp])
        o = jax.nn.sigmoid(g[:, 3 * Hp:4 * Hp])
        c_new = f * c + i * gg
        h_new = o * jnp.tanh(c_new)
        h = h + m_t * (h_new - h)
        c = c + m_t * (c_new - c)
        return (h, c), None

    h0 = jnp.zeros((B, Hp), jnp.float32)
    (h_last, _), _ = jax.lax.scan(step, (h0, h0), (xt, mt))
    y = jnp.einsum("bh,oh->bo", h_last, wfc) + bfc
    return jnp.maximum(y, 0.0)


if __name__ == "__main__":
    key = jax.random.PRNGKey(0)
    k_param, k_x = jax.random.split(key)

    B, T, D, H, O = 2, 8, 30, 64, 1
    params = init_params(k_param, input_size=D, hidden_size=H, output_size=O)
    x = jax.random.normal(k_x, (B, T, D), dtype=jnp.float32)
    lengths = jnp.array([5, 8], dtype=jnp.int32)            # variable-length sequences
    mask = (jnp.arange(T)[None, :] < lengths[:, None]).astype(jnp.float32)   # (B, T)

    fwd = jax.jit(masked_lstm_forward)
    out = jax.block_until_ready(fwd(x, mask, params))

    ref = _reference_forward(x, mask, params)
    assert out.shape == (B, O)
    assert jnp.allclose(out, ref, atol=2e-3, rtol=2e-3), (out, ref)

    print("KERNEL_OK")
</pallas_src>

<mosaic_0001>
module attributes {stable_mosaic.version = 11 : i64} {
  func.func @_masked_lstm_kernel(%arg0: i32, %arg1: memref<64x30xf32, #tpu.memory_space<vmem>>, %arg2: memref<8x8x1xf32, #tpu.memory_space<vmem>>, %arg3: memref<30x512xbf16, #tpu.memory_space<vmem>>, %arg4: memref<128x512xbf16, #tpu.memory_space<vmem>>, %arg5: memref<1x512xf32, #tpu.memory_space<vmem>>, %arg6: memref<1x128xf32, #tpu.memory_space<vmem>>, %arg7: memref<1x1xf32, #tpu.memory_space<vmem>>, %arg8: memref<8x1xf32, #tpu.memory_space<vmem>>, %arg9: memref<8x8x512xf32, #tpu.memory_space<vmem>>, %arg10: memref<8x8x128xf32, #tpu.memory_space<vmem>>) attributes {dimension_semantics = [#tpu.dimension_semantics<arbitrary>], iteration_bounds = array<i64: 1>, scalar_prefetch = 0 : i64, scratch_operands = 2 : i64, tpu.core_type = #tpu.core_type<tc>, window_params = [{pipeline_mode = #tpu.pipeline_mode<synchronous>, transform_indices = @transform_0, window_bounds = array<i64: 64, 30>}, {pipeline_mode = #tpu.pipeline_mode<synchronous>, transform_indices = @transform_1, window_bounds = array<i64: 8, 8, 1>}, {pipeline_mode = #tpu.pipeline_mode<synchronous>, transform_indices = @transform_2, window_bounds = array<i64: 30, 512>}, {pipeline_mode = #tpu.pipeline_mode<synchronous>, transform_indices = @transform_3, window_bounds = array<i64: 128, 512>}, {pipeline_mode = #tpu.pipeline_mode<synchronous>, transform_indices = @transform_4, window_bounds = array<i64: 1, 512>}, {pipeline_mode = #tpu.pipeline_mode<synchronous>, transform_indices = @transform_5, window_bounds = array<i64: 1, 128>}, {pipeline_mode = #tpu.pipeline_mode<synchronous>, transform_indices = @transform_6, window_bounds = array<i64: 1, 1>}, {pipeline_mode = #tpu.pipeline_mode<synchronous>, transform_indices = @transform_7, window_bounds = array<i64: 8, 1>}]} {
    %c0 = arith.constant 0 : index
    %c0_0 = arith.constant 0 : index
    %c0_1 = arith.constant 0 : index
    %0 = vector.load %arg2[%c0, %c0_0, %c0_1] : memref<8x8x1xf32, #tpu.memory_space<vmem>>, vector<8x8x1xf32>
    %1 = vector.shape_cast %0 : vector<8x8x1xf32> to vector<64x1xf32>
    %c0_2 = arith.constant 0 : index
    %c0_3 = arith.constant 0 : index
    %2 = vector.load %arg1[%c0_2, %c0_3] : memref<64x30xf32, #tpu.memory_space<vmem>>, vector<64x30xf32>
    %3 = vector.broadcast %1 : vector<64x1xf32> to vector<64x30xf32>
    %4 = arith.mulf %2, %3 : vector<64x30xf32>
    %5 = arith.truncf %4 : vector<64x30xf32> to vector<64x30xbf16>
    %c0_4 = arith.constant 0 : index
    %c0_5 = arith.constant 0 : index
    %6 = vector.load %arg3[%c0_4, %c0_5] : memref<30x512xbf16, #tpu.memory_space<vmem>>, vector<30x512xbf16>
    %cst = arith.constant dense<0.000000e+00> : vector<64x512xf32>
    %7 = tpu.matmul %5, %6, %cst {dimension_numbers = #tpu.dot_dimension_numbers<[1], [0], [0], [1], [0, 0, 1, 1], [], []>} : vector<64x30xbf16>, vector<30x512xbf16>, vector<64x512xf32> -> vector<64x512xf32>
    %c0_6 = arith.constant 0 : index
    %c0_7 = arith.constant 0 : index
    %8 = vector.load %arg5[%c0_6, %c0_7] : memref<1x512xf32, #tpu.memory_space<vmem>>, vector<1x512xf32>
    %9 = vector.broadcast %8 : vector<1x512xf32> to vector<64x512xf32>
    %10 = arith.addf %7, %9 : vector<64x512xf32>
    %11 = vector.shape_cast %10 : vector<64x512xf32> to vector<8x8x512xf32>
    %c0_8 = arith.constant 0 : index
    %c0_9 = arith.constant 0 : index
    %c0_10 = arith.constant 0 : index
    %12 = vector.load %arg9[%c0_8, %c0_9, %c0_10] : memref<8x8x512xf32, #tpu.memory_space<vmem>>, vector<8x8x512xf32>
    tpu.vector_store %arg9[%c0_8, %c0_9, %c0_10], %11 {strides = array<i32>} : memref<8x8x512xf32, #tpu.memory_space<vmem>>, vector<8x8x512xf32>,
    %c0_11 = arith.constant 0 : index
    %c0_12 = arith.constant 0 : index
    %c0_13 = arith.constant 0 : index
    %13 = vector.load %arg2[%c0_11, %c0_12, %c0_13] : memref<8x8x1xf32, #tpu.memory_space<vmem>>, vector<8x8x1xf32>
    %14 = vector.shape_cast %13 : vector<8x8x1xf32> to vector<8x8x1xf32>
    %15 = vector.broadcast %14 : vector<8x8x1xf32> to vector<8x8x128xf32>
    %c0_14 = arith.constant 0 : index
    %c0_15 = arith.constant 0 : index
    %c0_16 = arith.constant 0 : index
    %16 = vector.load %arg10[%c0_14, %c0_15, %c0_16] : memref<8x8x128xf32, #tpu.memory_space<vmem>>, vector<8x8x128xf32>
    tpu.vector_store %arg10[%c0_14, %c0_15, %c0_16], %15 {strides = array<i32>} : memref<8x8x128xf32, #tpu.memory_space<vmem>>, vector<8x8x128xf32>,
    %c0_17 = arith.constant 0 : index
    %c0_18 = arith.constant 0 : index
    %17 = vector.load %arg4[%c0_17, %c0_18] : memref<128x512xbf16, #tpu.memory_space<vmem>>, vector<128x512xbf16>
    %cst_19 = arith.constant 0.000000e+00 : f32
    %18 = vector.broadcast %cst_19 : f32 to vector<8x128xf32>
    %c0_i32 = arith.constant 0 : i32
    %19 = arith.index_cast %c0_i32 : i32 to index
    %c0_20 = arith.constant 0 : index
    %c0_21 = arith.constant 0 : index
    %20 = vector.load %arg9[%19, %c0_20, %c0_21] : memref<8x8x512xf32, #tpu.memory_space<vmem>>, vector<1x8x512xf32>
    %21 = vector.shape_cast %20 : vector<1x8x512xf32> to vector<8x512xf32>
    %22 = arith.truncf %18 : vector<8x128xf32> to vector<8x128xbf16>
    %cst_22 = arith.constant dense<0.000000e+00> : vector<8x512xf32>
    %23 = tpu.matmul %22, %17, %cst_22 {dimension_numbers = #tpu.dot_dimension_numbers<[1], [0], [0], [1], [0, 0, 1, 1], [], []>} : vector<8x128xbf16>, vector<128x512xbf16>, vector<8x512xf32> -> vector<8x512xf32>
    %24 = arith.addf %21, %23 : vector<8x512xf32>
    %25 = vector.extract_strided_slice %24 {offsets = [0, 0], sizes = [8, 128], strides = [1, 1]} : vector<8x512xf32> to vector<8x128xf32>
    %26 = arith.negf %25 : vector<8x128xf32>
    %27 = math.exp %26 : vector<8x128xf32>
    %cst_23 = arith.constant 1.000000e+00 : f32
    %28 = vector.broadcast %cst_23 : f32 to vector<8x128xf32>
    %29 = arith.addf %28, %27 : vector<8x128xf32>
    %30 = arith.divf %28, %29 : vector<8x128xf32>
    %31 = vector.extract_strided_slice %24 {offsets = [0, 128], sizes = [8, 128], strides = [1, 1]} : vector<8x512xf32> to vector<8x128xf32>
    %32 = arith.negf %31 : vector<8x128xf32>
    %33 = math.exp %32 : vector<8x128xf32>
    %cst_24 = arith.constant 1.000000e+00 : f32
    %34 = vector.broadcast %cst_24 : f32 to vector<8x128xf32>
    %35 = arith.addf %34, %33 : vector<8x128xf32>
    %36 = arith.divf %34, %35 : vector<8x128xf32>
    %37 = vector.extract_strided_slice %24 {offsets = [0, 256], sizes = [8, 128], strides = [1, 1]} : vector<8x512xf32> to vector<8x128xf32>
    %38 = math.tanh %37 : vector<8x128xf32>
    %39 = vector.extract_strided_slice %24 {offsets = [0, 384], sizes = [8, 128], strides = [1, 1]} : vector<8x512xf32> to vector<8x128xf32>
    %40 = arith.negf %39 : vector<8x128xf32>
    %41 = math.exp %40 : vector<8x128xf32>
    %cst_25 = arith.constant 1.000000e+00 : f32
    %42 = vector.broadcast %cst_25 : f32 to vector<8x128xf32>
    %43 = arith.addf %42, %41 : vector<8x128xf32>
    %44 = arith.divf %42, %43 : vector<8x128xf32>
    %45 = arith.mulf %36, %18 : vector<8x128xf32>
    %46 = arith.mulf %30, %38 : vector<8x128xf32>
    %47 = arith.addf %45, %46 : vector<8x128xf32>
    %48 = math.tanh %47 : vector<8x128xf32>
    %49 = arith.mulf %44, %48 : vector<8x128xf32>
    %50 = arith.index_cast %c0_i32 : i32 to index
    %c0_26 = arith.constant 0 : index
    %c0_27 = arith.constant 0 : index
    %51 = vector.load %arg10[%50, %c0_26, %c0_27] : memref<8x8x128xf32, #tpu.memory_space<vmem>>, vector<1x8x128xf32>
    %52 = vector.shape_cast %51 : vector<1x8x128xf32> to vector<8x128xf32>
    %53 = arith.subf %49, %18 : vector<8x128xf32>
    %54 = arith.mulf %52, %53 : vector<8x128xf32>
    %55 = arith.addf %18, %54 : vector<8x128xf32>
    %56 = arith.subf %47, %18 : vector<8x128xf32>
    %57 = arith.mulf %52, %56 : vector<8x128xf32>
    %58 = arith.addf %18, %57 : vector<8x128xf32>
    %c1_i32 = arith.constant 1 : i32
    %59 = arith.index_cast %c1_i32 : i32 to index
    %c0_28 = arith.constant 0 : index
    %c0_29 = arith.constant 0 : index
    %60 = vector.load %arg9[%59, %c0_28, %c0_29] : memref<8x8x512xf32, #tpu.memory_space<vmem>>, vector<1x8x512xf32>
    %61 = vector.shape_cast %60 : vector<1x8x512xf32> to vector<8x512xf32>
    %62 = arith.truncf %55 : vector<8x128xf32> to vector<8x128xbf16>
    %cst_30 = arith.constant dense<0.000000e+00> : vector<8x512xf32>
    %63 = tpu.matmul %62, %17, %cst_30 {dimension_numbers = #tpu.dot_dimension_numbers<[1], [0], [0], [1], [0, 0, 1, 1], [], []>} : vector<8x128xbf16>, vector<128x512xbf16>, vector<8x512xf32> -> vector<8x512xf32>
    %64 = arith.addf %61, %63 : vector<8x512xf32>
    %65 = vector.extract_strided_slice %64 {offsets = [0, 0], sizes = [8, 128], strides = [1, 1]} : vector<8x512xf32> to vector<8x128xf32>
    %66 = arith.negf %65 : vector<8x128xf32>
    %67 = math.exp %66 : vector<8x128xf32>
    %cst_31 = arith.constant 1.000000e+00 : f32
    %68 = vector.broadcast %cst_31 : f32 to vector<8x128xf32>
    %69 = arith.addf %68, %67 : vector<8x128xf32>
    %70 = arith.divf %68, %69 : vector<8x128xf32>
    %71 = vector.extract_strided_slice %64 {offsets = [0, 128], sizes = [8, 128], strides = [1, 1]} : vector<8x512xf32> to vector<8x128xf32>
    %72 = arith.negf %71 : vector<8x128xf32>
    %73 = math.exp %72 : vector<8x128xf32>
    %cst_32 = arith.constant 1.000000e+00 : f32
    %74 = vector.broadcast %cst_32 : f32 to vector<8x128xf32>
    %75 = arith.addf %74, %73 : vector<8x128xf32>
    %76 = arith.divf %74, %75 : vector<8x128xf32>
    %77 = vector.extract_strided_slice %64 {offsets = [0, 256], sizes = [8, 128], strides = [1, 1]} : vector<8x512xf32> to vector<8x128xf32>
    %78 = math.tanh %77 : vector<8x128xf32>
    %79 = vector.extract_strided_slice %64 {offsets = [0, 384], sizes = [8, 128], strides = [1, 1]} : vector<8x512xf32> to vector<8x128xf32>
    %80 = arith.negf %79 : vector<8x128xf32>
    %81 = math.exp %80 : vector<8x128xf32>
    %cst_33 = arith.constant 1.000000e+00 : f32
    %82 = vector.broadcast %cst_33 : f32 to vector<8x128xf32>
    %83 = arith.addf %82, %81 : vector<8x128xf32>
    %84 = arith.divf %82, %83 : vector<8x128xf32>
    %85 = arith.mulf %76, %58 : vector<8x128xf32>
    %86 = arith.mulf %70, %78 : vector<8x128xf32>
    %87 = arith.addf %85, %86 : vector<8x128xf32>
    %88 = math.tanh %87 : vector<8x128xf32>
    %89 = arith.mulf %84, %88 : vector<8x128xf32>
    %90 = arith.index_cast %c1_i32 : i32 to index
    %c0_34 = arith.constant 0 : index
    %c0_35 = arith.constant 0 : index
    %91 = vector.load %arg10[%90, %c0_34, %c0_35] : memref<8x8x128xf32, #tpu.memory_space<vmem>>, vector<1x8x128xf32>
    %92 = vector.shape_cast %91 : vector<1x8x128xf32> to vector<8x128xf32>
    %93 = arith.subf %89, %55 : vector<8x128xf32>
    %94 = arith.mulf %92, %93 : vector<8x128xf32>
    %95 = arith.addf %55, %94 : vector<8x128xf32>
    %96 = arith.subf %87, %58 : vector<8x128xf32>
    %97 = arith.mulf %92, %96 : vector<8x128xf32>
    %98 = arith.addf %58, %97 : vector<8x128xf32>
    %c2_i32 = arith.constant 2 : i32
    %99 = arith.index_cast %c2_i32 : i32 to index
    %c0_36 = arith.constant 0 : index
    %c0_37 = arith.constant 0 : index
    %100 = vector.load %arg9[%99, %c0_36, %c0_37] : memref<8x8x512xf32, #tpu.memory_space<vmem>>, vector<1x8x512xf32>
    %101 = vector.shape_cast %100 : vector<1x8x512xf32> to vector<8x512xf32>
    %102 = arith.truncf %95 : vector<8x128xf32> to vector<8x128xbf16>
    %cst_38 = arith.constant dense<0.000000e+00> : vector<8x512xf32>
    %103 = tpu.matmul %102, %17, %cst_38 {dimension_numbers = #tpu.dot_dimension_numbers<[1], [0], [0], [1], [0, 0, 1, 1], [], []>} : vector<8x128xbf16>, vector<128x512xbf16>, vector<8x512xf32> -> vector<8x512xf32>
    %104 = arith.addf %101, %103 : vector<8x512xf32>
    %105 = vector.extract_strided_slice %104 {offsets = [0, 0], sizes = [8, 128], strides = [1, 1]} : vector<8x512xf32> to vector<8x128xf32>
    %106 = arith.negf %105 : vector<8x128xf32>
    %107 = math.exp %106 : vector<8x128xf32>
    %cst_39 = arith.constant 1.000000e+00 : f32
    %108 = vector.broadcast %cst_39 : f32 to vector<8x128xf32>
    %109 = arith.addf %108, %107 : vector<8x128xf32>
    %110 = arith.divf %108, %109 : vector<8x128xf32>
    %111 = vector.extract_strided_slice %104 {offsets = [0, 128], sizes = [8, 128], strides = [1, 1]} : vector<8x512xf32> to vector<8x128xf32>
    %112 = arith.negf %111 : vector<8x128xf32>
    %113 = math.exp %112 : vector<8x128xf32>
    %cst_40 = arith.constant 1.000000e+00 : f32
    %114 = vector.broadcast %cst_40 : f32 to vector<8x128xf32>
    %115 = arith.addf %114, %113 : vector<8x128xf32>
    %116 = arith.divf %114, %115 : vector<8x128xf32>
    %117 = vector.extract_strided_slice %104 {offsets = [0, 256], sizes = [8, 128], strides = [1, 1]} : vector<8x512xf32> to vector<8x128xf32>
    %118 = math.tanh %117 : vector<8x128xf32>
    %119 = vector.extract_strided_slice %104 {offsets = [0, 384], sizes = [8, 128], strides = [1, 1]} : vector<8x512xf32> to vector<8x128xf32>
    %120 = arith.negf %119 : vector<8x128xf32>
    %121 = math.exp %120 : vector<8x128xf32>
    %cst_41 = arith.constant 1.000000e+00 : f32
    %122 = vector.broadcast %cst_41 : f32 to vector<8x128xf32>
    %123 = arith.addf %122, %121 : vector<8x128xf32>
    %124 = arith.divf %122, %123 : vector<8x128xf32>
    %125 = arith.mulf %116, %98 : vector<8x128xf32>
    %126 = arith.mulf %110, %118 : vector<8x128xf32>
    %127 = arith.addf %125, %126 : vector<8x128xf32>
    %128 = math.tanh %127 : vector<8x128xf32>
    %129 = arith.mulf %124, %128 : vector<8x128xf32>
    %130 = arith.index_cast %c2_i32 : i32 to index
    %c0_42 = arith.constant 0 : index
    %c0_43 = arith.constant 0 : index
    %131 = vector.load %arg10[%130, %c0_42, %c0_43] : memref<8x8x128xf32, #tpu.memory_space<vmem>>, vector<1x8x128xf32>
    %132 = vector.shape_cast %131 : vector<1x8x128xf32> to vector<8x128xf32>
    %133 = arith.subf %129, %95 : vector<8x128xf32>
    %134 = arith.mulf %132, %133 : vector<8x128xf32>
    %135 = arith.addf %95, %134 : vector<8x128xf32>
    %136 = arith.subf %127, %98 : vector<8x128xf32>
    %137 = arith.mulf %132, %136 : vector<8x128xf32>
    %138 = arith.addf %98, %137 : vector<8x128xf32>
    %c3_i32 = arith.constant 3 : i32
    %139 = arith.index_cast %c3_i32 : i32 to index
    %c0_44 = arith.constant 0 : index
    %c0_45 = arith.constant 0 : index
    %140 = vector.load %arg9[%139, %c0_44, %c0_45] : memref<8x8x512xf32, #tpu.memory_space<vmem>>, vector<1x8x512xf32>
    %141 = vector.shape_cast %140 : vector<1x8x512xf32> to vector<8x512xf32>
    %142 = arith.truncf %135 : vector<8x128xf32> to vector<8x128xbf16>
    %cst_46 = arith.constant dense<0.000000e+00> : vector<8x512xf32>
    %143 = tpu.matmul %142, %17, %cst_46 {dimension_numbers = #tpu.dot_dimension_numbers<[1], [0], [0], [1], [0, 0, 1, 1], [], []>} : vector<8x128xbf16>, vector<128x512xbf16>, vector<8x512xf32> -> vector<8x512xf32>
    %144 = arith.addf %141, %143 : vector<8x512xf32>
    %145 = vector.extract_strided_slice %144 {offsets = [0, 0], sizes = [8, 128], strides = [1, 1]} : vector<8x512xf32> to vector<8x128xf32>
    %146 = arith.negf %145 : vector<8x128xf32>
    %147 = math.exp %146 : vector<8x128xf32>
    %cst_47 = arith.constant 1.000000e+00 : f32
    %148 = vector.broadcast %cst_47 : f32 to vector<8x128xf32>
    %149 = arith.addf %148, %147 : vector<8x128xf32>
    %150 = arith.divf %148, %149 : vector<8x128xf32>
    %151 = vector.extract_strided_slice %144 {offsets = [0, 128], sizes = [8, 128], strides = [1, 1]} : vector<8x512xf32> to vector<8x128xf32>
    %152 = arith.negf %151 : vector<8x128xf32>
    %153 = math.exp %152 : vector<8x128xf32>
    %cst_48 = arith.constant 1.000000e+00 : f32
    %154 = vector.broadcast %cst_48 : f32 to vector<8x128xf32>
    %155 = arith.addf %154, %153 : vector<8x128xf32>
    %156 = arith.divf %154, %155 : vector<8x128xf32>
    %157 = vector.extract_strided_slice %144 {offsets = [0, 256], sizes = [8, 128], strides = [1, 1]} : vector<8x512xf32> to vector<8x128xf32>
    %158 = math.tanh %157 : vector<8x128xf32>
    %159 = vector.extract_strided_slice %144 {offsets = [0, 384], sizes = [8, 128], strides = [1, 1]} : vector<8x512xf32> to vector<8x128xf32>
    %160 = arith.negf %159 : vector<8x128xf32>
    %161 = math.exp %160 : vector<8x128xf32>
    %cst_49 = arith.constant 1.000000e+00 : f32
    %162 = vector.broadcast %cst_49 : f32 to vector<8x128xf32>
    %163 = arith.addf %162, %161 : vector<8x128xf32>
    %164 = arith.divf %162, %163 : vector<8x128xf32>
    %165 = arith.mulf %156, %138 : vector<8x128xf32>
    %166 = arith.mulf %150, %158 : vector<8x128xf32>
    %167 = arith.addf %165, %166 : vector<8x128xf32>
    %168 = math.tanh %167 : vector<8x128xf32>
    %169 = arith.mulf %164, %168 : vector<8x128xf32>
    %170 = arith.index_cast %c3_i32 : i32 to index
    %c0_50 = arith.constant 0 : index
    %c0_51 = arith.constant 0 : index
    %171 = vector.load %arg10[%170, %c0_50, %c0_51] : memref<8x8x128xf32, #tpu.memory_space<vmem>>, vector<1x8x128xf32>
    %172 = vector.shape_cast %171 : vector<1x8x128xf32> to vector<8x128xf32>
    %173 = arith.subf %169, %135 : vector<8x128xf32>
    %174 = arith.mulf %172, %173 : vector<8x128xf32>
    %175 = arith.addf %135, %174 : vector<8x128xf32>
    %176 = arith.subf %167, %138 : vector<8x128xf32>
    %177 = arith.mulf %172, %176 : vector<8x128xf32>
    %178 = arith.addf %138, %177 : vector<8x128xf32>
    %c4_i32 = arith.constant 4 : i32
    %179 = arith.index_cast %c4_i32 : i32 to index
    %c0_52 = arith.constant 0 : index
    %c0_53 = arith.constant 0 : index
    %180 = vector.load %arg9[%179, %c0_52, %c0_53] : memref<8x8x512xf32, #tpu.memory_space<vmem>>, vector<1x8x512xf32>
    %181 = vector.shape_cast %180 : vector<1x8x512xf32> to vector<8x512xf32>
    %182 = arith.truncf %175 : vector<8x128xf32> to vector<8x128xbf16>
    %cst_54 = arith.constant dense<0.000000e+00> : vector<8x512xf32>
    %183 = tpu.matmul %182, %17, %cst_54 {dimension_numbers = #tpu.dot_dimension_numbers<[1], [0], [0], [1], [0, 0, 1, 1], [], []>} : vector<8x128xbf16>, vector<128x512xbf16>, vector<8x512xf32> -> vector<8x512xf32>
    %184 = arith.addf %181, %183 : vector<8x512xf32>
    %185 = vector.extract_strided_slice %184 {offsets = [0, 0], sizes = [8, 128], strides = [1, 1]} : vector<8x512xf32> to vector<8x128xf32>
    %186 = arith.negf %185 : vector<8x128xf32>
    %187 = math.exp %186 : vector<8x128xf32>
    %cst_55 = arith.constant 1.000000e+00 : f32
    %188 = vector.broadcast %cst_55 : f32 to vector<8x128xf32>
    %189 = arith.addf %188, %187 : vector<8x128xf32>
    %190 = arith.divf %188, %189 : vector<8x128xf32>
    %191 = vector.extract_strided_slice %184 {offsets = [0, 128], sizes = [8, 128], strides = [1, 1]} : vector<8x512xf32> to vector<8x128xf32>
    %192 = arith.negf %191 : vector<8x128xf32>
    %193 = math.exp %192 : vector<8x128xf32>
    %cst_56 = arith.constant 1.000000e+00 : f32
    %194 = vector.broadcast %cst_56 : f32 to vector<8x128xf32>
    %195 = arith.addf %194, %193 : vector<8x128xf32>
    %196 = arith.divf %194, %195 : vector<8x128xf32>
    %197 = vector.extract_strided_slice %184 {offsets = [0, 256], sizes = [8, 128], strides = [1, 1]} : vector<8x512xf32> to vector<8x128xf32>
    %198 = math.tanh %197 : vector<8x128xf32>
    %199 = vector.extract_strided_slice %184 {offsets = [0, 384], sizes = [8, 128], strides = [1, 1]} : vector<8x512xf32> to vector<8x128xf32>
    %200 = arith.negf %199 : vector<8x128xf32>
    %201 = math.exp %200 : vector<8x128xf32>
    %cst_57 = arith.constant 1.000000e+00 : f32
    %202 = vector.broadcast %cst_57 : f32 to vector<8x128xf32>
    %203 = arith.addf %202, %201 : vector<8x128xf32>
    %204 = arith.divf %202, %203 : vector<8x128xf32>
    %205 = arith.mulf %196, %178 : vector<8x128xf32>
    %206 = arith.mulf %190, %198 : vector<8x128xf32>
    %207 = arith.addf %205, %206 : vector<8x128xf32>
    %208 = math.tanh %207 : vector<8x128xf32>
    %209 = arith.mulf %204, %208 : vector<8x128xf32>
    %210 = arith.index_cast %c4_i32 : i32 to index
    %c0_58 = arith.constant 0 : index
    %c0_59 = arith.constant 0 : index
    %211 = vector.load %arg10[%210, %c0_58, %c0_59] : memref<8x8x128xf32, #tpu.memory_space<vmem>>, vector<1x8x128xf32>
    %212 = vector.shape_cast %211 : vector<1x8x128xf32> to vector<8x128xf32>
    %213 = arith.subf %209, %175 : vector<8x128xf32>
    %214 = arith.mulf %212, %213 : vector<8x128xf32>
    %215 = arith.addf %175, %214 : vector<8x128xf32>
    %216 = arith.subf %207, %178 : vector<8x128xf32>
    %217 = arith.mulf %212, %216 : vector<8x128xf32>
    %218 = arith.addf %178, %217 : vector<8x128xf32>
    %c5_i32 = arith.constant 5 : i32
    %219 = arith.index_cast %c5_i32 : i32 to index
    %c0_60 = arith.constant 0 : index
    %c0_61 = arith.constant 0 : index
    %220 = vector.load %arg9[%219, %c0_60, %c0_61] : memref<8x8x512xf32, #tpu.memory_space<vmem>>, vector<1x8x512xf32>
    %221 = vector.shape_cast %220 : vector<1x8x512xf32> to vector<8x512xf32>
    %222 = arith.truncf %215 : vector<8x128xf32> to vector<8x128xbf16>
    %cst_62 = arith.constant dense<0.000000e+00> : vector<8x512xf32>
    %223 = tpu.matmul %222, %17, %cst_62 {dimension_numbers = #tpu.dot_dimension_numbers<[1], [0], [0], [1], [0, 0, 1, 1], [], []>} : vector<8x128xbf16>, vector<128x512xbf16>, vector<8x512xf32> -> vector<8x512xf32>
    %224 = arith.addf %221, %223 : vector<8x512xf32>
    %225 = vector.extract_strided_slice %224 {offsets = [0, 0], sizes = [8, 128], strides = [1, 1]} : vector<8x512xf32> to vector<8x128xf32>
    %226 = arith.negf %225 : vector<8x128xf32>
    %227 = math.exp %226 : vector<8x128xf32>
    %cst_63 = arith.constant 1.000000e+00 : f32
    %228 = vector.broadcast %cst_63 : f32 to vector<8x128xf32>
    %229 = arith.addf %228, %227 : vector<8x128xf32>
    %230 = arith.divf %228, %229 : vector<8x128xf32>
    %231 = vector.extract_strided_slice %224 {offsets = [0, 128], sizes = [8, 128], strides = [1, 1]} : vector<8x512xf32> to vector<8x128xf32>
    %232 = arith.negf %231 : vector<8x128xf32>
    %233 = math.exp %232 : vector<8x128xf32>
    %cst_64 = arith.constant 1.000000e+00 : f32
    %234 = vector.broadcast %cst_64 : f32 to vector<8x128xf32>
    %235 = arith.addf %234, %233 : vector<8x128xf32>
    %236 = arith.divf %234, %235 : vector<8x128xf32>
    %237 = vector.extract_strided_slice %224 {offsets = [0, 256], sizes = [8, 128], strides = [1, 1]} : vector<8x512xf32> to vector<8x128xf32>
    %238 = math.tanh %237 : vector<8x128xf32>
    %239 = vector.extract_strided_slice %224 {offsets = [0, 384], sizes = [8, 128], strides = [1, 1]} : vector<8x512xf32> to vector<8x128xf32>
    %240 = arith.negf %239 : vector<8x128xf32>
    %241 = math.exp %240 : vector<8x128xf32>
    %cst_65 = arith.constant 1.000000e+00 : f32
    %242 = vector.broadcast %cst_65 : f32 to vector<8x128xf32>
    %243 = arith.addf %242, %241 : vector<8x128xf32>
    %244 = arith.divf %242, %243 : vector<8x128xf32>
    %245 = arith.mulf %236, %218 : vector<8x128xf32>
    %246 = arith.mulf %230, %238 : vector<8x128xf32>
    %247 = arith.addf %245, %246 : vector<8x128xf32>
    %248 = math.tanh %247 : vector<8x128xf32>
    %249 = arith.mulf %244, %248 : vector<8x128xf32>
    %250 = arith.index_cast %c5_i32 : i32 to index
    %c0_66 = arith.constant 0 : index
    %c0_67 = arith.constant 0 : index
    %251 = vector.load %arg10[%250, %c0_66, %c0_67] : memref<8x8x128xf32, #tpu.memory_space<vmem>>, vector<1x8x128xf32>
    %252 = vector.shape_cast %251 : vector<1x8x128xf32> to vector<8x128xf32>
    %253 = arith.subf %249, %215 : vector<8x128xf32>
    %254 = arith.mulf %252, %253 : vector<8x128xf32>
    %255 = arith.addf %215, %254 : vector<8x128xf32>
    %256 = arith.subf %247, %218 : vector<8x128xf32>
    %257 = arith.mulf %252, %256 : vector<8x128xf32>
    %258 = arith.addf %218, %257 : vector<8x128xf32>
    %c6_i32 = arith.constant 6 : i32
    %259 = arith.index_cast %c6_i32 : i32 to index
    %c0_68 = arith.constant 0 : index
    %c0_69 = arith.constant 0 : index
    %260 = vector.load %arg9[%259, %c0_68, %c0_69] : memref<8x8x512xf32, #tpu.memory_space<vmem>>, vector<1x8x512xf32>
    %261 = vector.shape_cast %260 : vector<1x8x512xf32> to vector<8x512xf32>
    %262 = arith.truncf %255 : vector<8x128xf32> to vector<8x128xbf16>
    %cst_70 = arith.constant dense<0.000000e+00> : vector<8x512xf32>
    %263 = tpu.matmul %262, %17, %cst_70 {dimension_numbers = #tpu.dot_dimension_numbers<[1], [0], [0], [1], [0, 0, 1, 1], [], []>} : vector<8x128xbf16>, vector<128x512xbf16>, vector<8x512xf32> -> vector<8x512xf32>
    %264 = arith.addf %261, %263 : vector<8x512xf32>
    %265 = vector.extract_strided_slice %264 {offsets = [0, 0], sizes = [8, 128], strides = [1, 1]} : vector<8x512xf32> to vector<8x128xf32>
    %266 = arith.negf %265 : vector<8x128xf32>
    %267 = math.exp %266 : vector<8x128xf32>
    %cst_71 = arith.constant 1.000000e+00 : f32
    %268 = vector.broadcast %cst_71 : f32 to vector<8x128xf32>
    %269 = arith.addf %268, %267 : vector<8x128xf32>
    %270 = arith.divf %268, %269 : vector<8x128xf32>
    %271 = vector.extract_strided_slice %264 {offsets = [0, 128], sizes = [8, 128], strides = [1, 1]} : vector<8x512xf32> to vector<8x128xf32>
    %272 = arith.negf %271 : vector<8x128xf32>
    %273 = math.exp %272 : vector<8x128xf32>
    %cst_72 = arith.constant 1.000000e+00 : f32
    %274 = vector.broadcast %cst_72 : f32 to vector<8x128xf32>
    %275 = arith.addf %274, %273 : vector<8x128xf32>
    %276 = arith.divf %274, %275 : vector<8x128xf32>
    %277 = vector.extract_strided_slice %264 {offsets = [0, 256], sizes = [8, 128], strides = [1, 1]} : vector<8x512xf32> to vector<8x128xf32>
    %278 = math.tanh %277 : vector<8x128xf32>
    %279 = vector.extract_strided_slice %264 {offsets = [0, 384], sizes = [8, 128], strides = [1, 1]} : vector<8x512xf32> to vector<8x128xf32>
    %280 = arith.negf %279 : vector<8x128xf32>
    %281 = math.exp %280 : vector<8x128xf32>
    %cst_73 = arith.constant 1.000000e+00 : f32
    %282 = vector.broadcast %cst_73 : f32 to vector<8x128xf32>
    %283 = arith.addf %282, %281 : vector<8x128xf32>
    %284 = arith.divf %282, %283 : vector<8x128xf32>
    %285 = arith.mulf %276, %258 : vector<8x128xf32>
    %286 = arith.mulf %270, %278 : vector<8x128xf32>
    %287 = arith.addf %285, %286 : vector<8x128xf32>
    %288 = math.tanh %287 : vector<8x128xf32>
    %289 = arith.mulf %284, %288 : vector<8x128xf32>
    %290 = arith.index_cast %c6_i32 : i32 to index
    %c0_74 = arith.constant 0 : index
    %c0_75 = arith.constant 0 : index
    %291 = vector.load %arg10[%290, %c0_74, %c0_75] : memref<8x8x128xf32, #tpu.memory_space<vmem>>, vector<1x8x128xf32>
    %292 = vector.shape_cast %291 : vector<1x8x128xf32> to vector<8x128xf32>
    %293 = arith.subf %289, %255 : vector<8x128xf32>
    %294 = arith.mulf %292, %293 : vector<8x128xf32>
    %295 = arith.addf %255, %294 : vector<8x128xf32>
    %296 = arith.subf %287, %258 : vector<8x128xf32>
    %297 = arith.mulf %292, %296 : vector<8x128xf32>
    %298 = arith.addf %258, %297 : vector<8x128xf32>
    %c7_i32 = arith.constant 7 : i32
    %299 = arith.index_cast %c7_i32 : i32 to index
    %c0_76 = arith.constant 0 : index
    %c0_77 = arith.constant 0 : index
    %300 = vector.load %arg9[%299, %c0_76, %c0_77] : memref<8x8x512xf32, #tpu.memory_space<vmem>>, vector<1x8x512xf32>
    %301 = vector.shape_cast %300 : vector<1x8x512xf32> to vector<8x512xf32>
    %302 = arith.truncf %295 : vector<8x128xf32> to vector<8x128xbf16>
    %cst_78 = arith.constant dense<0.000000e+00> : vector<8x512xf32>
    %303 = tpu.matmul %302, %17, %cst_78 {dimension_numbers = #tpu.dot_dimension_numbers<[1], [0], [0], [1], [0, 0, 1, 1], [], []>} : vector<8x128xbf16>, vector<128x512xbf16>, vector<8x512xf32> -> vector<8x512xf32>
    %304 = arith.addf %301, %303 : vector<8x512xf32>
    %305 = vector.extract_strided_slice %304 {offsets = [0, 0], sizes = [8, 128], strides = [1, 1]} : vector<8x512xf32> to vector<8x128xf32>
    %306 = arith.negf %305 : vector<8x128xf32>
    %307 = math.exp %306 : vector<8x128xf32>
    %cst_79 = arith.constant 1.000000e+00 : f32
    %308 = vector.broadcast %cst_79 : f32 to vector<8x128xf32>
    %309 = arith.addf %308, %307 : vector<8x128xf32>
    %310 = arith.divf %308, %309 : vector<8x128xf32>
    %311 = vector.extract_strided_slice %304 {offsets = [0, 128], sizes = [8, 128], strides = [1, 1]} : vector<8x512xf32> to vector<8x128xf32>
    %312 = arith.negf %311 : vector<8x128xf32>
    %313 = math.exp %312 : vector<8x128xf32>
    %cst_80 = arith.constant 1.000000e+00 : f32
    %314 = vector.broadcast %cst_80 : f32 to vector<8x128xf32>
    %315 = arith.addf %314, %313 : vector<8x128xf32>
    %316 = arith.divf %314, %315 : vector<8x128xf32>
    %317 = vector.extract_strided_slice %304 {offsets = [0, 256], sizes = [8, 128], strides = [1, 1]} : vector<8x512xf32> to vector<8x128xf32>
    %318 = math.tanh %317 : vector<8x128xf32>
    %319 = vector.extract_strided_slice %304 {offsets = [0, 384], sizes = [8, 128], strides = [1, 1]} : vector<8x512xf32> to vector<8x128xf32>
    %320 = arith.negf %319 : vector<8x128xf32>
    %321 = math.exp %320 : vector<8x128xf32>
    %cst_81 = arith.constant 1.000000e+00 : f32
    %322 = vector.broadcast %cst_81 : f32 to vector<8x128xf32>
    %323 = arith.addf %322, %321 : vector<8x128xf32>
    %324 = arith.divf %322, %323 : vector<8x128xf32>
    %325 = arith.mulf %316, %298 : vector<8x128xf32>
    %326 = arith.mulf %310, %318 : vector<8x128xf32>
    %327 = arith.addf %325, %326 : vector<8x128xf32>
    %328 = math.tanh %327 : vector<8x128xf32>
    %329 = arith.mulf %324, %328 : vector<8x128xf32>
    %330 = arith.index_cast %c7_i32 : i32 to index
    %c0_82 = arith.constant 0 : index
    %c0_83 = arith.constant 0 : index
    %331 = vector.load %arg10[%330, %c0_82, %c0_83] : memref<8x8x128xf32, #tpu.memory_space<vmem>>, vector<1x8x128xf32>
    %332 = vector.shape_cast %331 : vector<1x8x128xf32> to vector<8x128xf32>
    %333 = arith.subf %329, %295 : vector<8x128xf32>
    %334 = arith.mulf %332, %333 : vector<8x128xf32>
    %335 = arith.addf %295, %334 : vector<8x128xf32>
    %336 = arith.subf %327, %298 : vector<8x128xf32>
    %337 = arith.mulf %332, %336 : vector<8x128xf32>
    %338 = arith.addf %298, %337 : vector<8x128xf32>
    %c8_i32 = arith.constant 8 : i32
    %c0_84 = arith.constant 0 : index
    %c0_85 = arith.constant 0 : index
    %339 = vector.load %arg6[%c0_84, %c0_85] : memref<1x128xf32, #tpu.memory_space<vmem>>, vector<1x128xf32>
    %340 = vector.broadcast %339 : vector<1x128xf32> to vector<8x128xf32>
    %341 = arith.mulf %335, %340 : vector<8x128xf32>
    %cst_86 = arith.constant dense<0.000000e+00> : vector<8xf32>
    %342 = vector.multi_reduction <add>, %341, %cst_86 [1] : vector<8x128xf32> to vector<8xf32>
    %343 = vector.shape_cast %342 : vector<8xf32> to vector<8x1xf32>
    %c0_87 = arith.constant 0 : index
    %c0_88 = arith.constant 0 : index
    %344 = vector.load %arg7[%c0_87, %c0_88] : memref<1x1xf32, #tpu.memory_space<vmem>>, vector<1x1xf32>
    %345 = vector.broadcast %344 : vector<1x1xf32> to vector<8x1xf32>
    %346 = arith.addf %343, %345 : vector<8x1xf32>
    %cst_89 = arith.constant 0.000000e+00 : f32
    %347 = vector.broadcast %cst_89 : f32 to vector<8x1xf32>
    %348 = arith.maximumf %346, %347 : vector<8x1xf32>
    %c0_90 = arith.constant 0 : index
    %c0_91 = arith.constant 0 : index
    %349 = vector.load %arg8[%c0_90, %c0_91] : memref<8x1xf32, #tpu.memory_space<vmem>>, vector<8x1xf32>
    tpu.vector_store %arg8[%c0_90, %c0_91], %348 {strides = array<i32>} : memref<8x1xf32, #tpu.memory_space<vmem>>, vector<8x1xf32>,
    return
  }
  func.func @transform_0(%arg0: i32) -> (i32, i32) {
    %c0_i32 = arith.constant 0 : i32
    %c0_i32_0 = arith.constant 0 : i32
    %c0_i32_1 = arith.constant 0 : i32
    return %c0_i32, %c0_i32_0 : i32, i32
  }
  func.func @transform_1(%arg0: i32) -> (i32, i32, i32) {
    %c0_i32 = arith.constant 0 : i32
    %c0_i32_0 = arith.constant 0 : i32
    %c0_i32_1 = arith.constant 0 : i32
    %c0_i32_2 = arith.constant 0 : i32
    return %c0_i32, %c0_i32_0, %c0_i32_1 : i32, i32, i32
  }
  func.func @transform_2(%arg0: i32) -> (i32, i32) {
    %c0_i32 = arith.constant 0 : i32
    %c0_i32_0 = arith.constant 0 : i32
    %c0_i32_1 = arith.constant 0 : i32
    return %c0_i32, %c0_i32_0 : i32, i32
  }
  func.func @transform_3(%arg0: i32) -> (i32, i32) {
    %c0_i32 = arith.constant 0 : i32
    %c0_i32_0 = arith.constant 0 : i32
    %c0_i32_1 = arith.constant 0 : i32
    return %c0_i32, %c0_i32_0 : i32, i32
  }
  func.func @transform_4(%arg0: i32) -> (i32, i32) {
    %c0_i32 = arith.constant 0 : i32
    %c0_i32_0 = arith.constant 0 : i32
    %c0_i32_1 = arith.constant 0 : i32
    return %c0_i32, %c0_i32_0 : i32, i32
  }
  func.func @transform_5(%arg0: i32) -> (i32, i32) {
    %c0_i32 = arith.constant 0 : i32
    %c0_i32_0 = arith.constant 0 : i32
    %c0_i32_1 = arith.constant 0 : i32
    return %c0_i32, %c0_i32_0 : i32, i32
  }
  func.func @transform_6(%arg0: i32) -> (i32, i32) {
    %c0_i32 = arith.constant 0 : i32
    %c0_i32_0 = arith.constant 0 : i32
    %c0_i32_1 = arith.constant 0 : i32
    return %c0_i32, %c0_i32_0 : i32, i32
  }
  func.func @transform_7(%arg0: i32) -> (i32, i32) {
    %c0_i32 = arith.constant 0 : i32
    %c0_i32_0 = arith.constant 0 : i32
    %c0_i32_1 = arith.constant 0 : i32
    return %c0_i32, %c0_i32_0 : i32, i32
  }
}

</mosaic_0001>

<bundles_post_ra>
// kernel: masked_lstm_forward.1
= control target key start
LH: loop header
LB: loop body
LE: loop exit
PB: predicated region body
PF: predicated region fallthrough
CT: control target
= control target key end

     0   :  { %s2856_s0 = inlined_call_operand.vmem [shape: f32[64,30], index: 0, kind: input, shape index: {}]   ;;  %s2857_s1 = inlined_call_operand.vmem [shape: f32[8,8,1], index: 1, kind: input, shape index: {}]   ;;  %s2858_s2 = inlined_call_operand.hbm [shape: bf16[30,512], index: 2, kind: input, shape index: {}]   ;;  %s2859_s3 = inlined_call_operand.vmem [shape: bf16[128,512], index: 3, kind: input, shape index: {}]   ;;  %s2860_s4 = inlined_call_operand.vmem [shape: f32[1,512], index: 4, kind: input, shape index: {}]   ;;  %s2861_s5 = inlined_call_operand.vmem [shape: f32[1,128], index: 5, kind: input, shape index: {}]   ;;  %s2862_s6 = inlined_call_operand.<no memory space> [shape: f32[1,1], index: 6, kind: input, shape index: {}]   ;;  %s2863_s7 = inlined_call_operand.vmem [shape: f32[8,1], index: 7, kind: output, shape index: {}]  }
   0x1   :  { %v12_v0 = vstv %s2862_s6 }
   0x2   :  { %13 = vst [vmem:[#allocation4] sm:$0x1] %v12_v0 }
   0x3   :  { %14 = vsyncpa [#allocation6], 0  ;;  %s1965_s26 = smov [#allocation5]   ;;  %s1941_s30 = scalar_lea.hbm %s2858_s2, 1024 }
   0x4   :  { %s24_s27 = sshll.u32 %s1965_s26, 4  ;;  %p1942_p0 = scmp.ne.s32.totalorder %s2858_s2, %s1941_s30  ;;  %s25_s27 = int_to_ptr.vmem [resolvable:$true] %s24_s27 }
   0x5   :  { %p1945_p1 = scmp.lt.u32.totalorder %s1941_s30, %s2858_s2 }
   0x7   :  { %p1947_p2 = pnand %p1945_p1, %p1942_p0 }
   0x9   :  { %1950 = shalt.err (!%p1947_p2)
}
   0xa   :  { %s1951_s6 = scalar_lea.vmem %s25_s27, 1024  ;;  %p1956_p4 = scmp.lt.s32.totalorder %s25_s27, %s25_s27 }
   0xb   :  { %p1952_p3 = scmp.ne.s32.totalorder %s25_s27, %s1951_s6  ;;  %p1957_p5 = scmp.lt.s32.totalorder %s1951_s6, %s1951_s6 }
   0xd   :  { %p1958_p6 = por %p1957_p5, %p1956_p4 }
   0xf   :  { %p1959_p7 = pnand %p1958_p6, %p1952_p3 }
  0x11   :  { %1962 = shalt.err (!%p1959_p7)
}
  0x12   :  { %s1966_s12 = smov 256   ;;  %s1967_s13 = smov 16  }
  0x13   :  { %30 = dma.hbm_to_vmem [thread:$0]  %s2858_s2, 1024, %s25_s27, [#allocation6], %s1966_s12, %s1966_s12, %s1967_s13  }
  0x14   :  { %1963 = dma.done.wait [#allocation6], 1024  }
  0x15   :  { %1964 = vsyncadd [#allocation6], 4294966272  ;;  %v2864_v1 = vmov 0   ;;  %v45_v2 = vld [vmem:[%s2857_s1 + $0x10] sm:$0xff]  ;;  %v43_v3 = vld [vmem:[%s2857_s1] sm:$0xff]  ;;  %vm190_vm0 = vcmask 1046528  }
  0x16   :  { %1720 = vset.pattern.permute.xlu1 %v2864_v1  ;;  %1719 = vset.pattern.permute.xlu0 %v2864_v1  ;;  %v46_v4 = vld [vmem:[%s2857_s1 + $0x18] sm:$0xff]  ;;  %v44_v5 = vld [vmem:[%s2857_s1 + $0x8] sm:$0xff]  ;;  %v47_v8 = vld [vmem:[%s2857_s1 + $0x20] sm:$0xff]  ;;  %vm177_vm1 = vcmask 244736   ;;  %vm1632_vm2 = vcmask 7168  }
  0x17   :  { %235 = vmatprep.mubr.bf16.mxu0 %v2864_v1  ;;  %308 = vmatprep.mubr.bf16.mxu1 %v2864_v1  ;;  %v1721_v6 = vld [vmem:[#allocation5 + $0x4] ss:$16 sps:$4 sm:$0xff]   ;;  %v1723_v9 = vld [vmem:[#allocation5] ss:$16 sps:$4 sm:$0xff]   ;;  %v1724_v10 = vld [vmem:[#allocation5 + $0xc] ss:$16 sps:$4 sm:$0xff]  }
  0x18   :  { %71 = vperm.xlu1 %1720, %v45_v2   ;;  %61 = vperm.xlu0 %1719, %v43_v3   ;;  %v48_v7 = vld [vmem:[%s2857_s1 + $0x28] sm:$0xff]  ;;  %v1729_v13 = vld [vmem:[#allocation5 + $0x20] ss:$16 sps:$4 sm:$0x7f]   ;;  %v50_v17 = vld [vmem:[%s2857_s1 + $0x38] sm:$0xff] }
  0x19   :  { %v1726_v11 = vld [vmem:[#allocation5 + $0x8] ss:$16 sps:$4 sm:$0xff]   ;;  %203 = vmatprep.subr.bf16.mxu0 %v1721_v6  ;;  %v1727_v12 = vld [vmem:[#allocation5 + $0x24] ss:$16 sps:$4 sm:$0x7f]   ;;  %276 = vmatprep.subr.bf16.mxu1 %v1724_v10  ;;  %v192_v15 = vsel %vm190_vm0, %v1729_v13, 0 }
  0x1a   :  { %204 = vmatpush1.bf16.msra.mxu0 %v1723_v9  ;;  %277 = vmatpush1.bf16.msra.mxu1 %v1726_v11  ;;  %v1730_v14 = vld [vmem:[#allocation5 + $0x2c] ss:$16 sps:$4 sm:$0x7f]   ;;  %v1732_v16 = vld [vmem:[#allocation5 + $0x28] ss:$16 sps:$4 sm:$0x7f]  }
  0x1b   :  { %1647 = vmatprep.subr.msk.bf16.mxu0 %vm190_vm0, %v1727_v12  ;;  %v49_v18 = vld [vmem:[%s2857_s1 + $0x30] sm:$0xff]  ;;  %1652 = vmatprep.subr.msk.bf16.mxu1 %vm190_vm0, %v1730_v14  ;;  %v198_v20 = vsel %vm190_vm0, %v1732_v16, 0  ;;  %v2065_v21 = vld [vmem:[%s2859_s3 + $0xc] ss:$16 sps:$4 sm:$0xff]   ;;  %v51_v23 = vld [vmem:[%s2856_s0] sm:$0xff] }
  0x1c   :  { %76 = vperm.xlu1 %1720, %v46_v4   ;;  %66 = vperm.xlu0 %1719, %v44_v5   ;;  %v2058_v19 = vld [vmem:[%s2859_s3 + $0x4] ss:$16 sps:$4 sm:$0xff]   ;;  %v52_v24 = vld [vmem:[%s2856_s0 + $0x8] sm:$0xff]  ;;  %v2077_v29 = vld [vmem:[%s2859_s3] ss:$16 sps:$4 sm:$0xff]  }
  0x1d   :  { %v2082_v30 = vld [vmem:[%s2859_s3 + $0x8] ss:$16 sps:$4 sm:$0xff]   ;;  %v2087_v32 = vld [vmem:[%s2859_s3 + $0x24] ss:$16 sps:$4 sm:$0xff]   ;;  %v2092_v33 = vld [vmem:[%s2859_s3 + $0x2c] ss:$16 sps:$4 sm:$0xff]  }
  0x1e   :  { %206 = vmatpush1.bf16.msra.mxu0 %v192_v15  ;;  %279 = vmatpush1.bf16.msra.mxu1 %v198_v20  ;;  %v53_v34 = vld [vmem:[%s2856_s0 + $0x10] sm:$0xff]  ;;  %v54_v35 = vld [vmem:[%s2856_s0 + $0x18] sm:$0xff]  ;;  %v56_v48 = vld [vmem:[%s2856_s0 + $0x28] sm:$0xff] }
  0x1f   :  { %633 = vmatprep.subr.bf16.mxu0 %v2058_v19  ;;  %674 = vmatprep.subr.bf16.mxu1 %v2065_v21  ;;  %v2107_v37 = vld [vmem:[%s2859_s3 + $0x20] ss:$16 sps:$4 sm:$0xff]   ;;  %v2112_v38 = vld [vmem:[%s2859_s3 + $0x28] ss:$16 sps:$4 sm:$0xff]   ;;  %v2119_v41 = vld [vmem:[%s2859_s3 + $0x44] ss:$16 sps:$4 sm:$0xff]  }
  0x20   :  { %86 = vperm.xlu1 %1720, %v48_v7   ;;  %81 = vperm.xlu0 %1719, %v47_v8   ;;  %v2124_v42 = vld [vmem:[%s2859_s3 + $0x4c] ss:$16 sps:$4 sm:$0xff]   ;;  %v2133_v43 = vld [vmem:[%s2859_s3 + $0x40] ss:$16 sps:$4 sm:$0xff]   ;;  %v2138_v44 = vld [vmem:[%s2859_s3 + $0x48] ss:$16 sps:$4 sm:$0xff]  }
  0x21   :  { %v2145_v46 = vld [vmem:[%s2859_s3 + $0x64] ss:$16 sps:$4 sm:$0xff]   ;;  %v2150_v47 = vld [vmem:[%s2859_s3 + $0x6c] ss:$16 sps:$4 sm:$0xff]   ;;  %v2165_v52 = vld [vmem:[%s2859_s3 + $0x60] ss:$16 sps:$4 sm:$0xff]  }
  0x22   :  { %v55_v50 = vld [vmem:[%s2856_s0 + $0x20] sm:$0xff]  ;;  %v2170_v53 = vld [vmem:[%s2859_s3 + $0x68] ss:$16 sps:$4 sm:$0xff]   ;;  %v2182_v57 = vld [vmem:[%s2859_s3 + $0x8c] ss:$16 sps:$4 sm:$0xff]  }
  0x23   :  { %v2177_v56 = vld [vmem:[%s2859_s3 + $0x84] ss:$16 sps:$4 sm:$0xff]   ;;  %v2191_v58 = vld [vmem:[%s2859_s3 + $0x80] ss:$16 sps:$4 sm:$0xff]   ;;  %v2196_v59 = vld [vmem:[%s2859_s3 + $0x88] ss:$16 sps:$4 sm:$0xff]  }
  0x24   :  { %96 = vperm.xlu1 %1720, %v50_v17   ;;  %91 = vperm.xlu0 %1719, %v49_v18   ;;  %v2203_v61 = vld [vmem:[%s2859_s3 + $0xa4] ss:$16 sps:$4 sm:$0xff]   ;;  %v2208_v62 = vld [vmem:[%s2859_s3 + $0xac] ss:$16 sps:$4 sm:$0xff]   ;;  %v2249_v10 = vld [vmem:[%s2859_s3 + $0xc0] ss:$16 sps:$4 sm:$0xff]  }
  0x25   :  { %v58_v63 = vld [vmem:[%s2856_s0 + $0x38] sm:$0xff]  ;;  %v2261_v13 = vld [vmem:[%s2859_s3 + $0xe4] ss:$16 sps:$4 sm:$0xff]   ;;  %v2275_v15 = vld [vmem:[%s2859_s3 + $0xe0] ss:$16 sps:$4 sm:$0xff]  }
  0x26   :  { %v2240_v9 = vld [vmem:[%s2859_s3 + $0xcc] ss:$16 sps:$4 sm:$0xff]   ;;  %v2254_v11 = vld [vmem:[%s2859_s3 + $0xc8] ss:$16 sps:$4 sm:$0xff]  }
  0x27   :  { %v2266_v14 = vld [vmem:[%s2859_s3 + $0xec] ss:$16 sps:$4 sm:$0xff]   ;;  %v2280_v16 = vld [vmem:[%s2859_s3 + $0xe8] ss:$16 sps:$4 sm:$0xff]  }
  0x28   :  { %396 = vperm.xlu1 %1720, %v44_v5   ;;  %391 = vperm.xlu0 %1719, %v43_v3   ;;  %v2228_v5 = vld [vmem:[%s2859_s3 + $0xa8] ss:$16 sps:$4 sm:$0xff]  }
  0x2c   :  { %406 = vperm.xlu1 %1720, %v46_v4   ;;  %401 = vperm.xlu0 %1719, %v45_v2   ;;  %v57_v2 = vld [vmem:[%s2856_s0 + $0x30] sm:$0xff] }
  0x2d   :  { %v2223_v4 = vld [vmem:[%s2859_s3 + $0xa0] ss:$16 sps:$4 sm:$0xff]  }
  0x30   :  { %416 = vperm.xlu1 %1720, %v48_v7   ;;  %411 = vperm.xlu0 %1719, %v47_v8   ;;  %v2235_v8 = vld [vmem:[%s2859_s3 + $0xc4] ss:$16 sps:$4 sm:$0xff]  }
  0x34   :  { %426 = vperm.xlu1 %1720, %v50_v17   ;;  %421 = vperm.xlu0 %1719, %v49_v18   ;;  %v121_v17 = vlaneseq }
  0x36   :  { %v122_v18 = vshrl.u32 %v121_v17, 7 }
  0x38   :  { %v123_v20 = vsub.s32 0, %v122_v18 }
  0x97   :  { %v62_v22 = vpop.permute.xlu0 %61  ;;  %v72_v25 = vpop.permute.xlu1 %71 }
  0x98   :  { %v99_v27 = vmul.f32 %v62_v22, %v51_v23  ;;  %v101_v39 = vmul.f32 %v72_v25, %v53_v34  ;;  %v131_v22 = vsub.s32 2, %v122_v18  ;;  %v119_v23 = vld [vmem:[%s2860_s4] sm:$0xf]  ;;  %v135_v25 = vsub.s32 3, %v122_v18 }
  0x9b   :  { %v67_v26 = vpop.permute.xlu0 %66  ;;  %v77_v36 = vpop.permute.xlu1 %76 }
  0x9c   :  { %v100_v28 = vmul.f32 %v67_v26, %v52_v24  ;;  %v102_v40 = vmul.f32 %v77_v36, %v54_v35  ;;  %v127_v24 = vsub.s32 1, %v122_v18 }
  0x9e   :  { %v107_v31 = vpack.c.bf16 %v100_v28, %v99_v27  ;;  %v108_v45 = vpack.c.bf16 %v102_v40, %v101_v39  ;;  %v124_v28 = vrot.slane %v119_v23, %v123_v20  ;;  %v128_v36 = vrot.slane %v119_v23, %v127_v24 }
  0x9f   :  { %v87_v49 = vpop.permute.xlu1 %86  ;;  %v82_v51 = vpop.permute.xlu0 %81  ;;  %v136_v39 = vrot.slane %v119_v23, %v135_v25 }
  0xa0   :  { %1648 = vmatmul.mubr.msk.bf16.vlgmr.msra.gmra.mrb[0].mxu0 %vm177_vm1, %v107_v31  ;;  %1653 = vmatmul.mubr.msk.bf16.vlgmr.msra.gmra.mrb[0].mxu1 %vm177_vm1, %v107_v31  ;;  %v104_v54 = vmul.f32 %v87_v49, %v56_v48  ;;  %v103_v55 = vmul.f32 %v82_v51, %v55_v50  ;;  %v132_v31 = vrot.slane %v119_v23, %v131_v22 }
  0xa1   :  { %634 = vmatpush1.bf16.msra.mxu0 %v2077_v29  ;;  %675 = vmatpush1.bf16.msra.mxu1 %v2082_v30 }
  0xa2   :  { %635 = vmatprep.subr.bf16.mxu0 %v2087_v32  ;;  %676 = vmatprep.subr.bf16.mxu1 %v2092_v33  ;;  %v109_v60 = vpack.c.bf16 %v104_v54, %v103_v55 }
  0xa3   :  { %245 = vmatprep.mubr.bf16.mxu0 %v2864_v1  ;;  %318 = vmatprep.mubr.bf16.mxu1 %v2864_v1  ;;  %v97_v0 = vpop.permute.xlu1 %96  ;;  %v92_v3 = vpop.permute.xlu0 %91 }
  0xa4   :  { %v106_v6 = vmul.f32 %v97_v0, %v58_v63  ;;  %v105_v7 = vmul.f32 %v92_v3, %v57_v2 }
  0xa5   :  { %636 = vmatpush1.bf16.msra.mxu0 %v2107_v37  ;;  %677 = vmatpush1.bf16.msra.mxu1 %v2112_v38 }
  0xa6   :  { %637 = vmatprep.subr.bf16.mxu0 %v2119_v41  ;;  %678 = vmatprep.subr.bf16.mxu1 %v2124_v42  ;;  %v110_v12 = vpack.c.bf16 %v106_v6, %v105_v7 }
  0xa8   :  { %1649 = vmatmul.mubr.msk.bf16.gmra.mrb[4].mxu0 %vm177_vm1, %v108_v45  ;;  %1654 = vmatmul.mubr.msk.bf16.gmra.mrb[4].mxu1 %vm177_vm1, %v108_v45 }
  0xa9   :  { %638 = vmatpush1.bf16.msra.mxu0 %v2133_v43  ;;  %679 = vmatpush1.bf16.msra.mxu1 %v2138_v44 }
  0xaa   :  { %639 = vmatprep.subr.bf16.mxu0 %v2145_v46  ;;  %680 = vmatprep.subr.bf16.mxu1 %v2150_v47 }
  0xab   :  { %255 = vmatprep.mubr.bf16.mxu0 %v2864_v1  ;;  %328 = vmatprep.mubr.bf16.mxu1 %v2864_v1 }
  0xad   :  { %640 = vmatpush1.bf16.msra.mxu0 %v2165_v52  ;;  %681 = vmatpush1.bf16.msra.mxu1 %v2170_v53 }
  0xae   :  { %641 = vmatprep.subr.bf16.mxu0 %v2177_v56  ;;  %682 = vmatprep.subr.bf16.mxu1 %v2182_v57 }
  0xb0   :  { %1650 = vmatmul.mubr.msk.bf16.gmra.mrb[8].mxu0 %vm177_vm1, %v109_v60  ;;  %1655 = vmatmul.mubr.msk.bf16.gmra.mrb[8].mxu1 %vm177_vm1, %v109_v60 }
  0xb1   :  { %642 = vmatpush1.bf16.msra.mxu0 %v2191_v58  ;;  %683 = vmatpush1.bf16.msra.mxu1 %v2196_v59 }
  0xb2   :  { %643 = vmatprep.subr.bf16.mxu0 %v2203_v61  ;;  %684 = vmatprep.subr.bf16.mxu1 %v2208_v62 }
  0xb3   :  { %265 = vmatprep.mubr.bf16.mxu0 %v2864_v1  ;;  %338 = vmatprep.mubr.bf16.mxu1 %v2864_v1 }
  0xb5   :  { %644 = vmatpush1.bf16.msra.mxu0 %v2223_v4  ;;  %685 = vmatpush1.bf16.msra.mxu1 %v2228_v5 }
  0xb6   :  { %645 = vmatprep.subr.bf16.mxu0 %v2235_v8  ;;  %686 = vmatprep.subr.bf16.mxu1 %v2240_v9 }
  0xb8   :  { %1651 = vmatmul.mubr.msk.bf16.gmra.mrb[12].mxu0 %vm177_vm1, %v110_v12  ;;  %1656 = vmatmul.mubr.msk.bf16.gmra.mrb[12].mxu1 %vm177_vm1, %v110_v12 }
  0xb9   :  { %646 = vmatpush1.bf16.msra.mxu0 %v2249_v10  ;;  %687 = vmatpush1.bf16.msra.mxu1 %v2254_v11 }
  0xba   :  { %647 = vmatprep.subr.bf16.mxu0 %v2261_v13  ;;  %688 = vmatprep.subr.bf16.mxu1 %v2266_v14 }
  0xbb   :  { %665 = vmatprep.mubr.bf16.mxu0 %v2864_v1  ;;  %706 = vmatprep.mubr.bf16.mxu1 %v2864_v1 }
  0xbd   :  { %648 = vmatpush1.bf16.msra.mxu0 %v2275_v15  ;;  %689 = vmatpush1.bf16.msra.mxu1 %v2280_v16 }
  0xbe   :  { %754 = vmatprep.subr.bf16.mxu0 %v2058_v19  ;;  %795 = vmatprep.subr.bf16.mxu1 %v2065_v21 }
  0xc0   :  { %666 = vmatmul.mubr.bf16.vlgmr.msra.gmra.mrb[16].mxu0 %v2864_v1  ;;  %707 = vmatmul.mubr.bf16.vlgmr.msra.gmra.mrb[16].mxu1 %v2864_v1 }
  0xc1   :  { %755 = vmatpush1.bf16.msra.mxu0 %v2077_v29  ;;  %796 = vmatpush1.bf16.msra.mxu1 %v2082_v30 }
  0xc2   :  { %756 = vmatprep.subr.bf16.mxu0 %v2087_v32  ;;  %797 = vmatprep.subr.bf16.mxu1 %v2092_v33 }
  0xc3   :  { %786 = vmatprep.mubr.bf16.mxu0 %v2864_v1  ;;  %827 = vmatprep.mubr.bf16.mxu1 %v2864_v1 }
  0xc5   :  { %757 = vmatpush1.bf16.msra.mxu0 %v2107_v37  ;;  %798 = vmatpush1.bf16.msra.mxu1 %v2112_v38 }
  0xc6   :  { %758 = vmatprep.subr.bf16.mxu0 %v2119_v41  ;;  %799 = vmatprep.subr.bf16.mxu1 %v2124_v42 }
  0xc9   :  { %759 = vmatpush1.bf16.msra.mxu0 %v2133_v43  ;;  %800 = vmatpush1.bf16.msra.mxu1 %v2138_v44 }
  0xca   :  { %760 = vmatprep.subr.bf16.mxu0 %v2145_v46  ;;  %801 = vmatprep.subr.bf16.mxu1 %v2150_v47 }
  0xcd   :  { %761 = vmatpush1.bf16.msra.mxu0 %v2165_v52  ;;  %802 = vmatpush1.bf16.msra.mxu1 %v2170_v53 }
  0xce   :  { %762 = vmatprep.subr.bf16.mxu0 %v2177_v56  ;;  %803 = vmatprep.subr.bf16.mxu1 %v2182_v57 }
  0xd1   :  { %763 = vmatpush1.bf16.msra.mxu0 %v2191_v58  ;;  %804 = vmatpush1.bf16.msra.mxu1 %v2196_v59 }
  0xd2   :  { %764 = vmatprep.subr.bf16.mxu0 %v2203_v61  ;;  %805 = vmatprep.subr.bf16.mxu1 %v2208_v62 }
  0xd5   :  { %765 = vmatpush1.bf16.msra.mxu0 %v2223_v4  ;;  %806 = vmatpush1.bf16.msra.mxu1 %v2228_v5 }
  0xd6   :  { %766 = vmatprep.subr.bf16.mxu0 %v2235_v8  ;;  %807 = vmatprep.subr.bf16.mxu1 %v2240_v9 }
  0xd9   :  { %767 = vmatpush1.bf16.msra.mxu0 %v2249_v10  ;;  %808 = vmatpush1.bf16.msra.mxu1 %v2254_v11 }
  0xda   :  { %768 = vmatprep.subr.bf16.mxu0 %v2261_v13  ;;  %809 = vmatprep.subr.bf16.mxu1 %v2266_v14 }
  0xdd   :  { %769 = vmatpush1.bf16.msra.mxu0 %v2275_v15  ;;  %810 = vmatpush1.bf16.msra.mxu1 %v2280_v16 }
  0xde   :  { %878 = vmatprep.subr.bf16.mxu0 %v2058_v19  ;;  %919 = vmatprep.subr.bf16.mxu1 %v2065_v21 }
 0x173   :  { %v2329_v26 = vpop.f32.mrb[0].mxu0  ;;  %v2331_v27 = vpop.f32.mrb[0].mxu1 }
 0x174   :  { %v239_v34 = vpop.f32.mrb[1].mxu0  ;;  %v312_v35 = vpop.f32.mrb[1].mxu1 }
 0x175   :  { %v241_v40 = vpop.f32.mrb[2].mxu0  ;;  %v314_v45 = vpop.f32.mrb[2].mxu1 }
 0x176   :  { %v2333_v48 = vadd.f32 %v241_v40, %v124_v28  ;;  %v2335_v49 = vadd.f32 %v314_v45, %v132_v31  ;;  %v243_v50 = vpop.f32.mrb[3].mxu0  ;;  %v316_v51 = vpop.f32.mrb[3].mxu1 }
 0x177   :  { %v2337_v54 = vadd.f32 %v243_v50, %v128_v36  ;;  %v2339_v55 = vadd.f32 %v316_v51, %v136_v39 }
 0x17b   :  { %v247_v60 = vpop.f32.mrb[4].mxu0  ;;  %v320_v63 = vpop.f32.mrb[4].mxu1 }
 0x17c   :  { %v2341_v0 = vadd.f32 %v247_v60, %v124_v28  ;;  %v2343_v2 = vadd.f32 %v320_v63, %v132_v31  ;;  %v249_v3 = vpop.f32.mrb[5].mxu0  ;;  %v322_v6 = vpop.f32.mrb[5].mxu1 }
 0x17d   :  { %v2345_v7 = vadd.f32 %v249_v3, %v128_v36  ;;  %v2347_v12 = vadd.f32 %v322_v6, %v136_v39  ;;  %v251_v17 = vpop.f32.mrb[6].mxu0  ;;  %v324_v18 = vpop.f32.mrb[6].mxu1 }
 0x17e   :  { %v2349_v20 = vadd.f32 %v251_v17, %v124_v28  ;;  %v2351_v22 = vadd.f32 %v324_v18, %v132_v31  ;;  %v253_v23 = vpop.f32.mrb[7].mxu0  ;;  %v326_v24 = vpop.f32.mrb[7].mxu1 }
 0x17f   :  { %2866 = vst [vmem:[#allocation8_spill] sm:$0xff] %v2345_v7  ;;  %2867 = vst [vmem:[#allocation9_spill] sm:$0xff] %v2347_v12  ;;  %v2353_v25 = vadd.f32 %v253_v23, %v128_v36  ;;  %v2355_v40 = vadd.f32 %v326_v24, %v136_v39 }
 0x180   :  { %2868 = vst [vmem:[#allocation10_spill] sm:$0xff] %v2349_v20  ;;  %2869 = vst [vmem:[#allocation11_spill] sm:$0xff] %v2351_v22 }
 0x181   :  { %2870 = vst [vmem:[#allocation12_spill] sm:$0xff] %v2353_v25  ;;  %2871 = vst [vmem:[#allocation13_spill] sm:$0xff] %v2355_v40 }
 0x183   :  { %v257_v45 = vpop.f32.mrb[8].mxu0  ;;  %v330_v50 = vpop.f32.mrb[8].mxu1 }
 0x184   :  { %v2357_v51 = vadd.f32 %v257_v45, %v124_v28  ;;  %v2359_v60 = vadd.f32 %v330_v50, %v132_v31  ;;  %v259_v63 = vpop.f32.mrb[9].mxu0  ;;  %v332_v3 = vpop.f32.mrb[9].mxu1 }
 0x185   :  { %v2361_v6 = vadd.f32 %v259_v63, %v128_v36  ;;  %v2363_v17 = vadd.f32 %v332_v3, %v136_v39  ;;  %v261_v18 = vpop.f32.mrb[10].mxu0  ;;  %v334_v1 = vpop.f32.mrb[10].mxu1 }
 0x186   :  { %2872 = vst [vmem:[#allocation14_spill] sm:$0xff] %v2357_v51  ;;  %2873 = vst [vmem:[#allocation15_spill] sm:$0xff] %v2359_v60  ;;  %v2365_v22 = vadd.f32 %v261_v18, %v124_v28  ;;  %v2367_v23 = vadd.f32 %v334_v1, %v132_v31  ;;  %v263_v24 = vpop.f32.mrb[11].mxu0  ;;  %v336_v40 = vpop.f32.mrb[11].mxu1 }
 0x187   :  { %2874 = vst [vmem:[#allocation16_spill] sm:$0xff] %v2361_v6  ;;  %2875 = vst [vmem:[#allocation17_spill] sm:$0xff] %v2363_v17  ;;  %v2369_v25 = vadd.f32 %v263_v24, %v128_v36  ;;  %v2371_v45 = vadd.f32 %v336_v40, %v136_v39 }
 0x188   :  { %2876 = vst [vmem:[#allocation18_spill] sm:$0xff] %v2365_v22  ;;  %2877 = vst [vmem:[#allocation19_spill] sm:$0xff] %v2367_v23 }
 0x189   :  { %2878 = vst [vmem:[#allocation20_spill] sm:$0xff] %v2369_v25  ;;  %2879 = vst [vmem:[#allocation21_spill] sm:$0xff] %v2371_v45 }
 0x18b   :  { %v267_v50 = vpop.f32.mrb[12].mxu0  ;;  %v340_v60 = vpop.f32.mrb[12].mxu1 }
 0x18c   :  { %v2373_v51 = vadd.f32 %v267_v50, %v124_v28  ;;  %v2375_v63 = vadd.f32 %v340_v60, %v132_v31  ;;  %v269_v3 = vpop.f32.mrb[13].mxu0  ;;  %v342_v17 = vpop.f32.mrb[13].mxu1  ;;  %v238_v60 = vadd.f32 %v2329_v26, %v124_v28 }
 0x18d   :  { %v2377_v6 = vadd.f32 %v269_v3, %v128_v36  ;;  %v2379_v18 = vadd.f32 %v342_v17, %v136_v39  ;;  %v271_v1 = vpop.f32.mrb[14].mxu0  ;;  %v344_v23 = vpop.f32.mrb[14].mxu1  ;;  %v240_v3 = vadd.f32 %v239_v34, %v128_v36 }
 0x18e   :  { %2880 = vst [vmem:[#allocation22_spill] sm:$0xff] %v2373_v51  ;;  %2881 = vst [vmem:[#allocation23_spill] sm:$0xff] %v2375_v63  ;;  %v2381_v22 = vadd.f32 %v271_v1, %v124_v28  ;;  %v2383_v24 = vadd.f32 %v344_v23, %v132_v31  ;;  %v273_v40 = vpop.f32.mrb[15].mxu0  ;;  %v346_v45 = vpop.f32.mrb[15].mxu1  ;;  %v311_v63 = vadd.f32 %v2331_v27, %v132_v31 }
 0x18f   :  { %2882 = vst [vmem:[#allocation24_spill] sm:$0xff] %v2377_v6  ;;  %2883 = vst [vmem:[#allocation25_spill] sm:$0xff] %v2379_v18  ;;  %v2385_v25 = vadd.f32 %v273_v40, %v128_v36  ;;  %v2387_v50 = vadd.f32 %v346_v45, %v136_v39  ;;  %v313_v6 = vadd.f32 %v312_v35, %v136_v39 }
 0x190   :  { %2884 = vst [vmem:[#allocation26_spill] sm:$0xff] %v2381_v22  ;;  %2885 = vst [vmem:[#allocation27_spill] sm:$0xff] %v2383_v24 }
 0x191   :  { %2886 = vst [vmem:[#allocation28_spill] sm:$0xff] %v2385_v25  ;;  %2887 = vst [vmem:[#allocation29_spill] sm:$0xff] %v2387_v50 }
 0x193   :  { %v667_v17 = vpop.f32.mrb[16].mxu0  ;;  %v708_v18 = vpop.f32.mrb[16].mxu1 }
 0x194   :  { %v715_v51 = vadd.f32 %v667_v17, %v238_v60  ;;  %v717_v20 = vadd.f32 %v708_v18, %v311_v63  ;;  %v669_v1 = vpop.f32.mrb[17].mxu0  ;;  %v710_v22 = vpop.f32.mrb[17].mxu1  ;;  %v2888_v60 = vmov 0  }
 0x195   :  { %v716_v23 = vadd.f32 %v669_v1, %v240_v3  ;;  %v718_v24 = vadd.f32 %v710_v22, %v313_v6  ;;  %v671_v12 = vpop.f32.mrb[18].mxu0  ;;  %v712_v7 = vpop.f32.mrb[18].mxu1 }
 0x196   :  { %v1689_v40 = vmul.f32 -1.442695, %v715_v51  ;;  %v672_v25 = vpop.f32.mrb[19].mxu0  ;;  %v713_v45 = vpop.f32.mrb[19].mxu1 }
 0x197   :  { %v1690_v50 = vmul.f32 -1.442695, %v716_v23  ;;  %v1691_v26 = vmul.f32 -1.442695, %v718_v24  ;;  %v2394_v24 = vpop.permute.xlu0 %391 }
 0x198   :  { %1781 = vpow2.f32 %v1689_v40 }
 0x199   :  { %1783 = vpow2.f32 %v1690_v50 }
 0x19a   :  { %1785 = vpow2.f32 %v1691_v26 }
 0x19b   :  { %1787 = vtanh.f32 %v717_v20 }
 0x1a2   :  { %v1782_v27 = vpop.eup %1781 }
 0x1a3   :  { %v1784_v28 = vpop.eup %1783  ;;  %v722_v31 = vadd.f32 1.0, %v1782_v27 }
 0x1a4   :  { %v728_v34 = vadd.f32 1.0, %v1784_v28  ;;  %v1786_v35 = vpop.eup %1785 }
 0x1a5   :  { %1789 = vrcp.f32 %v722_v31  ;;  %v1788_v36 = vpop.eup %1787  ;;  %v735_v22 = vadd.f32 1.0, %v1786_v35 }
 0x1a6   :  { %1791 = vrcp.f32 %v728_v34 }
 0x1a7   :  { %1793 = vrcp.f32 %v735_v22 }
 0x1af   :  { %v1790_v39 = vpop.eup %1789 }
 0x1b0   :  { %v1792_v12 = vpop.eup %1791  ;;  %v739_v7 = vmul.f32 %v1790_v39, %v1788_v36 }
 0x1b1   :  { %v738_v25 = vmul.f32 0.0, %v1792_v12  ;;  %v1794_v6 = vpop.eup %1793 }
 0x1b3   :  { %v2391_v51 = vadd.f32 %v739_v7, %v738_v25 }
 0x1b5   :  { %1795 = vtanh.f32 %v2391_v51 }
 0x1bf   :  { %v1796_v63 = vpop.eup %1795 }
 0x1c0   :  { %v742_v18 = vmul.f32 %v1796_v63, %v1794_v6  ;;  %v746_v6 = vmul.f32 %v2391_v51, %v2394_v24 }
 0x1c2   :  { %v2397_v20 = vmul.f32 %v742_v18, %v2394_v24 }
 0x1c4   :  { %v753_v50 = vpack.c.bf16 %v2397_v20, %v2397_v20 }
 0x1c6   :  { %787 = vmatmul.mubr.bf16.vlgmr.msra.gmra.mrb[20].mxu0 %v753_v50  ;;  %828 = vmatmul.mubr.bf16.vlgmr.msra.gmra.mrb[20].mxu1 %v753_v50 }
 0x1c7   :  { %879 = vmatpush1.bf16.msra.mxu0 %v2077_v29  ;;  %920 = vmatpush1.bf16.msra.mxu1 %v2082_v30 }
 0x1c8   :  { %880 = vmatprep.subr.bf16.mxu0 %v2087_v32  ;;  %921 = vmatprep.subr.bf16.mxu1 %v2092_v33 }
 0x1c9   :  { %910 = vmatprep.mubr.bf16.mxu0 %v2888_v60  ;;  %951 = vmatprep.mubr.bf16.mxu1 %v2888_v60 }
 0x1cb   :  { %881 = vmatpush1.bf16.msra.mxu0 %v2107_v37  ;;  %922 = vmatpush1.bf16.msra.mxu1 %v2112_v38 }
 0x1cc   :  { %882 = vmatprep.subr.bf16.mxu0 %v2119_v41  ;;  %923 = vmatprep.subr.bf16.mxu1 %v2124_v42 }
 0x1cf   :  { %883 = vmatpush1.bf16.msra.mxu0 %v2133_v43  ;;  %924 = vmatpush1.bf16.msra.mxu1 %v2138_v44 }
 0x1d0   :  { %884 = vmatprep.subr.bf16.mxu0 %v2145_v46  ;;  %925 = vmatprep.subr.bf16.mxu1 %v2150_v47 }
 0x1d3   :  { %885 = vmatpush1.bf16.msra.mxu0 %v2165_v52  ;;  %926 = vmatpush1.bf16.msra.mxu1 %v2170_v53 }
 0x1d4   :  { %886 = vmatprep.subr.bf16.mxu0 %v2177_v56  ;;  %927 = vmatprep.subr.bf16.mxu1 %v2182_v57 }
 0x1d7   :  { %887 = vmatpush1.bf16.msra.mxu0 %v2191_v58  ;;  %928 = vmatpush1.bf16.msra.mxu1 %v2196_v59 }
 0x1d8   :  { %888 = vmatprep.subr.bf16.mxu0 %v2203_v61  ;;  %929 = vmatprep.subr.bf16.mxu1 %v2208_v62 }
 0x1db   :  { %889 = vmatpush1.bf16.msra.mxu0 %v2223_v4  ;;  %930 = vmatpush1.bf16.msra.mxu1 %v2228_v5 }
 0x1dc   :  { %890 = vmatprep.subr.bf16.mxu0 %v2235_v8  ;;  %931 = vmatprep.subr.bf16.mxu1 %v2240_v9 }
 0x1df   :  { %891 = vmatpush1.bf16.msra.mxu0 %v2249_v10  ;;  %932 = vmatpush1.bf16.msra.mxu1 %v2254_v11 }
 0x1e0   :  { %892 = vmatprep.subr.bf16.mxu0 %v2261_v13  ;;  %933 = vmatprep.subr.bf16.mxu1 %v2266_v14 }
 0x1e3   :  { %893 = vmatpush1.bf16.msra.mxu0 %v2275_v15  ;;  %934 = vmatpush1.bf16.msra.mxu1 %v2280_v16 }
 0x1e4   :  { %1002 = vmatprep.subr.bf16.mxu0 %v2058_v19  ;;  %1043 = vmatprep.subr.bf16.mxu1 %v2065_v21 }
 0x299   :  { %v788_v3 = vpop.f32.mrb[20].mxu0  ;;  %v829_v17 = vpop.f32.mrb[20].mxu1 }
 0x29a   :  { %v836_v1 = vadd.f32 %v788_v3, %v2333_v48  ;;  %v838_v23 = vadd.f32 %v829_v17, %v2335_v49  ;;  %v790_v40 = vpop.f32.mrb[21].mxu0  ;;  %v831_v45 = vpop.f32.mrb[21].mxu1 }
 0x29b   :  { %v837_v26 = vadd.f32 %v790_v40, %v2337_v54  ;;  %v839_v27 = vadd.f32 %v831_v45, %v2339_v55  ;;  %v792_v28 = vpop.f32.mrb[22].mxu0  ;;  %v833_v31 = vpop.f32.mrb[22].mxu1 }
 0x29c   :  { %v1692_v34 = vmul.f32 -1.442695, %v836_v1  ;;  %v793_v35 = vpop.f32.mrb[23].mxu0  ;;  %v834_v36 = vpop.f32.mrb[23].mxu1 }
 0x29d   :  { %v1693_v39 = vmul.f32 -1.442695, %v837_v26  ;;  %v1694_v12 = vmul.f32 -1.442695, %v839_v27  ;;  %v397_v40 = vpop.permute.xlu1 %396 }
 0x29e   :  { %1797 = vpow2.f32 %v1692_v34 }
 0x29f   :  { %1799 = vpow2.f32 %v1693_v39 }
 0x2a0   :  { %1801 = vpow2.f32 %v1694_v12 }
 0x2a1   :  { %1803 = vtanh.f32 %v838_v23 }
 0x2a8   :  { %v1798_v7 = vpop.eup %1797 }
 0x2a9   :  { %v1800_v22 = vpop.eup %1799  ;;  %v843_v48 = vadd.f32 1.0, %v1798_v7 }
 0x2aa   :  { %v849_v49 = vadd.f32 1.0, %v1800_v22  ;;  %v1802_v54 = vpop.eup %1801  ;;  %v2889_v22 = vld [vmem:[#allocation8_spill] sm:$0xff] }
 0x2ab   :  { %1805 = vrcp.f32 %v843_v48  ;;  %v1804_v25 = vpop.eup %1803  ;;  %v856_v50 = vadd.f32 1.0, %v1802_v54 }
 0x2ac   :  { %1807 = vrcp.f32 %v849_v49  ;;  %v2890_v49 = vld [vmem:[#allocation9_spill] sm:$0xff] }
 0x2ad   :  { %1809 = vrcp.f32 %v856_v50 }
 0x2b5   :  { %v1806_v55 = vpop.eup %1805 }
 0x2b6   :  { %v1808_v63 = vpop.eup %1807  ;;  %v860_v18 = vmul.f32 %v1806_v55, %v1804_v25 }
 0x2b7   :  { %v859_v3 = vmul.f32 %v1808_v63, %v746_v6  ;;  %v1810_v26 = vpop.eup %1809 }
 0x2b9   :  { %v861_v17 = vadd.f32 %v860_v18, %v859_v3 }
 0x2bb   :  { %1811 = vtanh.f32 %v861_v17  ;;  %v869_v1 = vsub.f32 %v861_v17, %v746_v6 }
 0x2bd   :  { %v870_v45 = vmul.f32 %v869_v1, %v397_v40 }
 0x2bf   :  { %v2441_v23 = vadd.f32 %v870_v45, %v746_v6 }
 0x2c5   :  { %v1812_v27 = vpop.eup %1811 }
 0x2c6   :  { %v863_v28 = vmul.f32 %v1812_v27, %v1810_v26 }
 0x2c8   :  { %v866_v31 = vsub.f32 %v863_v28, %v2397_v20 }
 0x2ca   :  { %v867_v34 = vmul.f32 %v866_v31, %v397_v40 }
 0x2cc   :  { %v2445_v51 = vadd.f32 %v867_v34, %v2397_v20 }
 0x2ce   :  { %v877_v24 = vpack.c.bf16 %v2445_v51, %v2445_v51 }
 0x2d0   :  { %911 = vmatmul.mubr.bf16.vlgmr.msra.gmra.mrb[24].mxu0 %v877_v24  ;;  %952 = vmatmul.mubr.bf16.vlgmr.msra.gmra.mrb[24].mxu1 %v877_v24 }
 0x2d1   :  { %1003 = vmatpush1.bf16.msra.mxu0 %v2077_v29  ;;  %1044 = vmatpush1.bf16.msra.mxu1 %v2082_v30 }
 0x2d2   :  { %1004 = vmatprep.subr.bf16.mxu0 %v2087_v32  ;;  %1045 = vmatprep.subr.bf16.mxu1 %v2092_v33 }
 0x2d3   :  { %1034 = vmatprep.mubr.bf16.mxu0 %v2888_v60  ;;  %1075 = vmatprep.mubr.bf16.mxu1 %v2888_v60 }
 0x2d5   :  { %1005 = vmatpush1.bf16.msra.mxu0 %v2107_v37  ;;  %1046 = vmatpush1.bf16.msra.mxu1 %v2112_v38 }
 0x2d6   :  { %1006 = vmatprep.subr.bf16.mxu0 %v2119_v41  ;;  %1047 = vmatprep.subr.bf16.mxu1 %v2124_v42 }
 0x2d9   :  { %1007 = vmatpush1.bf16.msra.mxu0 %v2133_v43  ;;  %1048 = vmatpush1.bf16.msra.mxu1 %v2138_v44 }
 0x2da   :  { %1008 = vmatprep.subr.bf16.mxu0 %v2145_v46  ;;  %1049 = vmatprep.subr.bf16.mxu1 %v2150_v47 }
 0x2dd   :  { %1009 = vmatpush1.bf16.msra.mxu0 %v2165_v52  ;;  %1050 = vmatpush1.bf16.msra.mxu1 %v2170_v53 }
 0x2de   :  { %1010 = vmatprep.subr.bf16.mxu0 %v2177_v56  ;;  %1051 = vmatprep.subr.bf16.mxu1 %v2182_v57 }
 0x2e1   :  { %1011 = vmatpush1.bf16.msra.mxu0 %v2191_v58  ;;  %1052 = vmatpush1.bf16.msra.mxu1 %v2196_v59 }
 0x2e2   :  { %1012 = vmatprep.subr.bf16.mxu0 %v2203_v61  ;;  %1053 = vmatprep.subr.bf16.mxu1 %v2208_v62 }
 0x2e5   :  { %1013 = vmatpush1.bf16.msra.mxu0 %v2223_v4  ;;  %1054 = vmatpush1.bf16.msra.mxu1 %v2228_v5 }
 0x2e6   :  { %1014 = vmatprep.subr.bf16.mxu0 %v2235_v8  ;;  %1055 = vmatprep.subr.bf16.mxu1 %v2240_v9 }
 0x2e9   :  { %1015 = vmatpush1.bf16.msra.mxu0 %v2249_v10  ;;  %1056 = vmatpush1.bf16.msra.mxu1 %v2254_v11 }
 0x2ea   :  { %1016 = vmatprep.subr.bf16.mxu0 %v2261_v13  ;;  %1057 = vmatprep.subr.bf16.mxu1 %v2266_v14 }
 0x2ed   :  { %1017 = vmatpush1.bf16.msra.mxu0 %v2275_v15  ;;  %1058 = vmatpush1.bf16.msra.mxu1 %v2280_v16 }
 0x2ee   :  { %1126 = vmatprep.subr.bf16.mxu0 %v2058_v19  ;;  %1167 = vmatprep.subr.bf16.mxu1 %v2065_v21 }
 0x3a3   :  { %v912_v20 = vpop.f32.mrb[24].mxu0  ;;  %v953_v35 = vpop.f32.mrb[24].mxu1 }
 0x3a4   :  { %v960_v36 = vadd.f32 %v912_v20, %v2341_v0  ;;  %v962_v39 = vadd.f32 %v953_v35, %v2343_v2  ;;  %v914_v12 = vpop.f32.mrb[25].mxu0  ;;  %v955_v7 = vpop.f32.mrb[25].mxu1 }
 0x3a5   :  { %v961_v48 = vadd.f32 %v914_v12, %v2889_v22  ;;  %v963_v54 = vadd.f32 %v955_v7, %v2890_v49  ;;  %v916_v25 = vpop.f32.mrb[26].mxu0  ;;  %v957_v55 = vpop.f32.mrb[26].mxu1 }
 0x3a6   :  { %v1695_v6 = vmul.f32 -1.442695, %v960_v36  ;;  %v917_v63 = vpop.f32.mrb[27].mxu0  ;;  %v958_v18 = vpop.f32.mrb[27].mxu1  ;;  %v2891_v55 = vld [vmem:[#allocation10_spill] sm:$0xff] }
 0x3a7   :  { %v1696_v50 = vmul.f32 -1.442695, %v961_v48  ;;  %v1697_v3 = vmul.f32 -1.442695, %v963_v54  ;;  %v402_v35 = vpop.permute.xlu0 %401  ;;  %v2892_v63 = vld [vmem:[#allocation11_spill] sm:$0xff] }
 0x3a8   :  { %1813 = vpow2.f32 %v1695_v6 }
 0x3a9   :  { %1815 = vpow2.f32 %v1696_v50 }
 0x3aa   :  { %1817 = vpow2.f32 %v1697_v3 }
 0x3ab   :  { %1819 = vtanh.f32 %v962_v39 }
 0x3b2   :  { %v1814_v17 = vpop.eup %1813 }
 0x3b3   :  { %v1816_v1 = vpop.eup %1815  ;;  %v967_v0 = vadd.f32 1.0, %v1814_v17  ;;  %v2893_v17 = vld [vmem:[#allocation12_spill] sm:$0xff] }
 0x3b4   :  { %v973_v2 = vadd.f32 1.0, %v1816_v1  ;;  %v1818_v40 = vpop.eup %1817 }
 0x3b5   :  { %1821 = vrcp.f32 %v967_v0  ;;  %v1820_v45 = vpop.eup %1819  ;;  %v980_v31 = vadd.f32 1.0, %v1818_v40  ;;  %v2894_v0 = vld [vmem:[#allocation13_spill] sm:$0xff] }
 0x3b6   :  { %1823 = vrcp.f32 %v973_v2 }
 0x3b7   :  { %1825 = vrcp.f32 %v980_v31 }
 0x3bf   :  { %v1822_v26 = vpop.eup %1821 }
 0x3c0   :  { %v1824_v27 = vpop.eup %1823  ;;  %v984_v28 = vmul.f32 %v1822_v26, %v1820_v45 }
 0x3c1   :  { %v983_v34 = vmul.f32 %v1824_v27, %v2441_v23  ;;  %v1826_v12 = vpop.eup %1825 }
 0x3c3   :  { %v985_v24 = vadd.f32 %v984_v28, %v983_v34 }
 0x3c5   :  { %1827 = vtanh.f32 %v985_v24  ;;  %v993_v20 = vsub.f32 %v985_v24, %v2441_v23 }
 0x3c7   :  { %v994_v36 = vmul.f32 %v993_v20, %v402_v35 }
 0x3c9   :  { %v2490_v39 = vadd.f32 %v994_v36, %v2441_v23 }
 0x3cf   :  { %v1828_v7 = vpop.eup %1827 }
 0x3d0   :  { %v987_v22 = vmul.f32 %v1828_v7, %v1826_v12 }
 0x3d2   :  { %v990_v48 = vsub.f32 %v987_v22, %v2445_v51 }
 0x3d4   :  { %v991_v49 = vmul.f32 %v990_v48, %v402_v35 }
 0x3d6   :  { %v2494_v54 = vadd.f32 %v991_v49, %v2445_v51 }
 0x3d8   :  { %v1001_v25 = vpack.c.bf16 %v2494_v54, %v2494_v54 }
 0x3da   :  { %1035 = vmatmul.mubr.bf16.vlgmr.msra.gmra.mrb[28].mxu0 %v1001_v25  ;;  %1076 = vmatmul.mubr.bf16.vlgmr.msra.gmra.mrb[28].mxu1 %v1001_v25 }
 0x3db   :  { %1127 = vmatpush1.bf16.msra.mxu0 %v2077_v29  ;;  %1168 = vmatpush1.bf16.msra.mxu1 %v2082_v30 }
 0x3dc   :  { %1128 = vmatprep.subr.bf16.mxu0 %v2087_v32  ;;  %1169 = vmatprep.subr.bf16.mxu1 %v2092_v33 }
 0x3dd   :  { %1158 = vmatprep.mubr.bf16.mxu0 %v2888_v60  ;;  %1199 = vmatprep.mubr.bf16.mxu1 %v2888_v60 }
 0x3df   :  { %1129 = vmatpush1.bf16.msra.mxu0 %v2107_v37  ;;  %1170 = vmatpush1.bf16.msra.mxu1 %v2112_v38 }
 0x3e0   :  { %1130 = vmatprep.subr.bf16.mxu0 %v2119_v41  ;;  %1171 = vmatprep.subr.bf16.mxu1 %v2124_v42 }
 0x3e3   :  { %1131 = vmatpush1.bf16.msra.mxu0 %v2133_v43  ;;  %1172 = vmatpush1.bf16.msra.mxu1 %v2138_v44 }
 0x3e4   :  { %1132 = vmatprep.subr.bf16.mxu0 %v2145_v46  ;;  %1173 = vmatprep.subr.bf16.mxu1 %v2150_v47 }
 0x3e7   :  { %1133 = vmatpush1.bf16.msra.mxu0 %v2165_v52  ;;  %1174 = vmatpush1.bf16.msra.mxu1 %v2170_v53 }
 0x3e8   :  { %1134 = vmatprep.subr.bf16.mxu0 %v2177_v56  ;;  %1175 = vmatprep.subr.bf16.mxu1 %v2182_v57 }
 0x3eb   :  { %1135 = vmatpush1.bf16.msra.mxu0 %v2191_v58  ;;  %1176 = vmatpush1.bf16.msra.mxu1 %v2196_v59 }
 0x3ec   :  { %1136 = vmatprep.subr.bf16.mxu0 %v2203_v61  ;;  %1177 = vmatprep.subr.bf16.mxu1 %v2208_v62 }
 0x3ef   :  { %1137 = vmatpush1.bf16.msra.mxu0 %v2223_v4  ;;  %1178 = vmatpush1.bf16.msra.mxu1 %v2228_v5 }
 0x3f0   :  { %1138 = vmatprep.subr.bf16.mxu0 %v2235_v8  ;;  %1179 = vmatprep.subr.bf16.mxu1 %v2240_v9 }
 0x3f3   :  { %1139 = vmatpush1.bf16.msra.mxu0 %v2249_v10  ;;  %1180 = vmatpush1.bf16.msra.mxu1 %v2254_v11 }
 0x3f4   :  { %1140 = vmatprep.subr.bf16.mxu0 %v2261_v13  ;;  %1181 = vmatprep.subr.bf16.mxu1 %v2266_v14 }
 0x3f7   :  { %1141 = vmatpush1.bf16.msra.mxu0 %v2275_v15  ;;  %1182 = vmatpush1.bf16.msra.mxu1 %v2280_v16 }
 0x3f8   :  { %1250 = vmatprep.subr.bf16.mxu0 %v2058_v19  ;;  %1291 = vmatprep.subr.bf16.mxu1 %v2065_v21 }
 0x4ad   :  { %v1036_v23 = vpop.f32.mrb[28].mxu0  ;;  %v1077_v51 = vpop.f32.mrb[28].mxu1 }
 0x4ae   :  { %v1084_v6 = vadd.f32 %v1036_v23, %v2891_v55  ;;  %v1086_v18 = vadd.f32 %v1077_v51, %v2892_v63  ;;  %v1038_v50 = vpop.f32.mrb[29].mxu0  ;;  %v1079_v3 = vpop.f32.mrb[29].mxu1 }
 0x4af   :  { %v1085_v1 = vadd.f32 %v1038_v50, %v2893_v17  ;;  %v1087_v2 = vadd.f32 %v1079_v3, %v2894_v0  ;;  %v1040_v40 = vpop.f32.mrb[30].mxu0  ;;  %v1081_v45 = vpop.f32.mrb[30].mxu1 }
 0x4b0   :  { %v1698_v26 = vmul.f32 -1.442695, %v1084_v6  ;;  %v1041_v27 = vpop.f32.mrb[31].mxu0  ;;  %v1082_v28 = vpop.f32.mrb[31].mxu1 }
 0x4b1   :  { %v1699_v19 = vmul.f32 -1.442695, %v1085_v1  ;;  %v1700_v21 = vmul.f32 -1.442695, %v1087_v2  ;;  %v407_v51 = vpop.permute.xlu1 %406  ;;  %v412_v45 = vpop.permute.xlu0 %411 }
 0x4b2   :  { %1829 = vpow2.f32 %v1698_v26 }
 0x4b3   :  { %1831 = vpow2.f32 %v1699_v19 }
 0x4b4   :  { %1833 = vpow2.f32 %v1700_v21 }
 0x4b5   :  { %1835 = vtanh.f32 %v1086_v18 }
 0x4bc   :  { %v1830_v31 = vpop.eup %1829 }
 0x4bd   :  { %v1832_v34 = vpop.eup %1831  ;;  %v1091_v24 = vadd.f32 1.0, %v1830_v31 }
 0x4be   :  { %v1097_v20 = vadd.f32 1.0, %v1832_v34  ;;  %v1834_v35 = vpop.eup %1833 }
 0x4bf   :  { %1837 = vrcp.f32 %v1091_v24  ;;  %v1836_v36 = vpop.eup %1835  ;;  %v1104_v48 = vadd.f32 1.0, %v1834_v35  ;;  %v2609_v35 = vld [vmem:[%s2859_s3] ss:$16 sps:$4 sm:$0xff]  }
 0x4c0   :  { %1839 = vrcp.f32 %v1097_v20 }
 0x4c1   :  { %1841 = vrcp.f32 %v1104_v48  ;;  %v2641_v48 = vld [vmem:[%s2859_s3 + $0x28] ss:$16 sps:$4 sm:$0xff]  }
 0x4c9   :  { %v1838_v12 = vpop.eup %1837 }
 0x4ca   :  { %v1840_v7 = vpop.eup %1839  ;;  %v1108_v22 = vmul.f32 %v1838_v12, %v1836_v36  ;;  %v2615_v36 = vld [vmem:[%s2859_s3 + $0x8] ss:$16 sps:$4 sm:$0xff]   ;;  %v2621_v12 = vld [vmem:[%s2859_s3 + $0x24] ss:$16 sps:$4 sm:$0xff]  }
 0x4cb   :  { %v1107_v49 = vmul.f32 %v1840_v7, %v2490_v39  ;;  %v1842_v63 = vpop.eup %1841  ;;  %v2627_v7 = vld [vmem:[%s2859_s3 + $0x2c] ss:$16 sps:$4 sm:$0xff]  }
 0x4cd   :  { %v1109_v25 = vadd.f32 %v1108_v22, %v1107_v49  ;;  %v2635_v22 = vld [vmem:[%s2859_s3 + $0x20] ss:$16 sps:$4 sm:$0xff]   ;;  %v2647_v49 = vld [vmem:[%s2859_s3 + $0x44] ss:$16 sps:$4 sm:$0xff]  }
 0x4cf   :  { %1843 = vtanh.f32 %v1109_v25  ;;  %v1117_v23 = vsub.f32 %v1109_v25, %v2490_v39  ;;  %v2653_v25 = vld [vmem:[%s2859_s3 + $0x4c] ss:$16 sps:$4 sm:$0xff]  }
 0x4d1   :  { %v1118_v55 = vmul.f32 %v1117_v23, %v407_v51  ;;  %v2659_v23 = vld [vmem:[%s2859_s3 + $0x40] ss:$16 sps:$4 sm:$0xff]  }
 0x4d3   :  { %v2539_v6 = vadd.f32 %v1118_v55, %v2490_v39  ;;  %v2671_v55 = vld [vmem:[%s2859_s3 + $0x64] ss:$16 sps:$4 sm:$0xff]  }
 0x4d9   :  { %v1844_v18 = vpop.eup %1843 }
 0x4da   :  { %v1111_v50 = vmul.f32 %v1844_v18, %v1842_v63  ;;  %v2683_v63 = vld [vmem:[%s2859_s3 + $0x60] ss:$16 sps:$4 sm:$0xff]   ;;  %v2689_v18 = vld [vmem:[%s2859_s3 + $0x68] ss:$16 sps:$4 sm:$0xff]  }
 0x4dc   :  { %v1114_v3 = vsub.f32 %v1111_v50, %v2494_v54  ;;  %v2695_v50 = vld [vmem:[%s2859_s3 + $0x84] ss:$16 sps:$4 sm:$0xff]  }
 0x4de   :  { %v1115_v17 = vmul.f32 %v1114_v3, %v407_v51  ;;  %v2665_v51 = vld [vmem:[%s2859_s3 + $0x48] ss:$16 sps:$4 sm:$0xff]   ;;  %v2701_v3 = vld [vmem:[%s2859_s3 + $0x8c] ss:$16 sps:$4 sm:$0xff]  }
 0x4e0   :  { %v2543_v1 = vadd.f32 %v1115_v17, %v2494_v54  ;;  %v2707_v17 = vld [vmem:[%s2859_s3 + $0x80] ss:$16 sps:$4 sm:$0xff]  }
 0x4e2   :  { %v1125_v0 = vpack.c.bf16 %v2543_v1, %v2543_v1 }
 0x4e4   :  { %1159 = vmatmul.mubr.bf16.vlgmr.msra.gmra.mrb[32].mxu0 %v1125_v0  ;;  %1200 = vmatmul.mubr.bf16.vlgmr.msra.gmra.mrb[32].mxu1 %v1125_v0  ;;  %v2719_v0 = vld [vmem:[%s2859_s3 + $0xa4] ss:$16 sps:$4 sm:$0xff]  }
 0x4e5   :  { %1251 = vmatpush1.bf16.msra.mxu0 %v2077_v29  ;;  %1292 = vmatpush1.bf16.msra.mxu1 %v2082_v30  ;;  %v2582_v29 = vld [vmem:[%s2859_s3 + $0x4] ss:$16 sps:$4 sm:$0xff]   ;;  %v2588_v30 = vld [vmem:[%s2859_s3 + $0xc] ss:$16 sps:$4 sm:$0xff]  }
 0x4e6   :  { %1252 = vmatprep.subr.bf16.mxu0 %v2087_v32  ;;  %1293 = vmatprep.subr.bf16.mxu1 %v2092_v33 }
 0x4e7   :  { %1282 = vmatprep.mubr.bf16.mxu0 %v2888_v60  ;;  %1323 = vmatprep.mubr.bf16.mxu1 %v2888_v60 }
 0x4e9   :  { %1253 = vmatpush1.bf16.msra.mxu0 %v2107_v37  ;;  %1294 = vmatpush1.bf16.msra.mxu1 %v2112_v38  ;;  %v2895_v37 = vld [vmem:[#allocation14_spill] sm:$0xff] }
 0x4ea   :  { %1254 = vmatprep.subr.bf16.mxu0 %v2119_v41  ;;  %1295 = vmatprep.subr.bf16.mxu1 %v2124_v42  ;;  %v2896_v41 = vld [vmem:[#allocation15_spill] sm:$0xff] }
 0x4ed   :  { %1255 = vmatpush1.bf16.msra.mxu0 %v2133_v43  ;;  %1296 = vmatpush1.bf16.msra.mxu1 %v2138_v44 }
 0x4ee   :  { %1256 = vmatprep.subr.bf16.mxu0 %v2145_v46  ;;  %1297 = vmatprep.subr.bf16.mxu1 %v2150_v47  ;;  %v2897_v46 = vld [vmem:[#allocation16_spill] sm:$0xff] }
 0x4f1   :  { %1257 = vmatpush1.bf16.msra.mxu0 %v2165_v52  ;;  %1298 = vmatpush1.bf16.msra.mxu1 %v2170_v53  ;;  %v2898_v52 = vld [vmem:[#allocation17_spill] sm:$0xff] }
 0x4f2   :  { %1258 = vmatprep.subr.bf16.mxu0 %v2177_v56  ;;  %1299 = vmatprep.subr.bf16.mxu1 %v2182_v57 }
 0x4f5   :  { %1259 = vmatpush1.bf16.msra.mxu0 %v2191_v58  ;;  %1300 = vmatpush1.bf16.msra.mxu1 %v2196_v59 }
 0x4f6   :  { %1260 = vmatprep.subr.bf16.mxu0 %v2203_v61  ;;  %1301 = vmatprep.subr.bf16.mxu1 %v2208_v62 }
 0x4f9   :  { %1261 = vmatpush1.bf16.msra.mxu0 %v2223_v4  ;;  %1302 = vmatpush1.bf16.msra.mxu1 %v2228_v5 }
 0x4fa   :  { %1262 = vmatprep.subr.bf16.mxu0 %v2235_v8  ;;  %1303 = vmatprep.subr.bf16.mxu1 %v2240_v9 }
 0x4fd   :  { %1263 = vmatpush1.bf16.msra.mxu0 %v2249_v10  ;;  %1304 = vmatpush1.bf16.msra.mxu1 %v2254_v11 }
 0x4fe   :  { %1264 = vmatprep.subr.bf16.mxu0 %v2261_v13  ;;  %1305 = vmatprep.subr.bf16.mxu1 %v2266_v14 }
 0x501   :  { %1265 = vmatpush1.bf16.msra.mxu0 %v2275_v15  ;;  %1306 = vmatpush1.bf16.msra.mxu1 %v2280_v16 }
 0x502   :  { %1374 = vmatprep.subr.bf16.mxu0 %v2582_v29  ;;  %1415 = vmatprep.subr.bf16.mxu1 %v2588_v30 }
 0x5b7   :  { %v1160_v32 = vpop.f32.mrb[32].mxu0  ;;  %v1201_v33 = vpop.f32.mrb[32].mxu1 }
 0x5b8   :  { %v1208_v38 = vadd.f32 %v1160_v32, %v2895_v37  ;;  %v1210_v42 = vadd.f32 %v1201_v33, %v2896_v41  ;;  %v1162_v43 = vpop.f32.mrb[33].mxu0  ;;  %v1203_v44 = vpop.f32.mrb[33].mxu1  ;;  %v2725_v32 = vld [vmem:[%s2859_s3 + $0xac] ss:$16 sps:$4 sm:$0xff]   ;;  %v2731_v33 = vld [vmem:[%s2859_s3 + $0xa0] ss:$16 sps:$4 sm:$0xff]  }
 0x5b9   :  { %v1209_v47 = vadd.f32 %v1162_v43, %v2897_v46  ;;  %v1211_v53 = vadd.f32 %v1203_v44, %v2898_v52  ;;  %v1164_v56 = vpop.f32.mrb[34].mxu0  ;;  %v1205_v57 = vpop.f32.mrb[34].mxu1  ;;  %v2737_v37 = vld [vmem:[%s2859_s3 + $0xa8] ss:$16 sps:$4 sm:$0xff]   ;;  %v2749_v41 = vld [vmem:[%s2859_s3 + $0xcc] ss:$16 sps:$4 sm:$0xff]  }
 0x5ba   :  { %v1701_v58 = vmul.f32 -1.442695, %v1208_v38  ;;  %v1165_v59 = vpop.f32.mrb[35].mxu0  ;;  %v1206_v61 = vpop.f32.mrb[35].mxu1  ;;  %v2743_v38 = vld [vmem:[%s2859_s3 + $0xc4] ss:$16 sps:$4 sm:$0xff]  }
 0x5bb   :  { %v1702_v62 = vmul.f32 -1.442695, %v1209_v47  ;;  %v1703_v4 = vmul.f32 -1.442695, %v1211_v53  ;;  %v2761_v43 = vld [vmem:[%s2859_s3 + $0xc8] ss:$16 sps:$4 sm:$0xff]  }
 0x5bc   :  { %1845 = vpow2.f32 %v1701_v58  ;;  %v2767_v44 = vld [vmem:[%s2859_s3 + $0xe4] ss:$16 sps:$4 sm:$0xff]   ;;  %v2773_v46 = vld [vmem:[%s2859_s3 + $0xec] ss:$16 sps:$4 sm:$0xff]   ;;  %v2779_v47 = vld [vmem:[%s2859_s3 + $0xe0] ss:$16 sps:$4 sm:$0xff]  }
 0x5bd   :  { %1847 = vpow2.f32 %v1702_v62  ;;  %v2785_v52 = vld [vmem:[%s2859_s3 + $0xe8] ss:$16 sps:$4 sm:$0xff]  }
 0x5be   :  { %1849 = vpow2.f32 %v1703_v4  ;;  %v2899_v57 = vld [vmem:[#allocation18_spill] sm:$0xff]  ;;  %v2900_v59 = vld [vmem:[#allocation19_spill] sm:$0xff] }
 0x5bf   :  { %1851 = vtanh.f32 %v1210_v42  ;;  %v2755_v42 = vld [vmem:[%s2859_s3 + $0xc0] ss:$16 sps:$4 sm:$0xff]  }
 0x5c6   :  { %v1846_v5 = vpop.eup %1845 }
 0x5c7   :  { %v1848_v8 = vpop.eup %1847  ;;  %v1215_v9 = vadd.f32 1.0, %v1846_v5  ;;  %v2901_v5 = vld [vmem:[#allocation20_spill] sm:$0xff] }
 0x5c8   :  { %v1221_v10 = vadd.f32 1.0, %v1848_v8  ;;  %v1850_v11 = vpop.eup %1849 }
 0x5c9   :  { %1853 = vrcp.f32 %v1215_v9  ;;  %v1852_v13 = vpop.eup %1851  ;;  %v1228_v39 = vadd.f32 1.0, %v1850_v11  ;;  %v2902_v9 = vld [vmem:[#allocation21_spill] sm:$0xff] }
 0x5ca   :  { %1855 = vrcp.f32 %v1221_v10 }
 0x5cb   :  { %1857 = vrcp.f32 %v1228_v39 }
 0x5d3   :  { %v1854_v14 = vpop.eup %1853 }
 0x5d4   :  { %v1856_v15 = vpop.eup %1855  ;;  %v1232_v16 = vmul.f32 %v1854_v14, %v1852_v13 }
 0x5d5   :  { %v1231_v54 = vmul.f32 %v1856_v15, %v2539_v6  ;;  %v1858_v28 = vpop.eup %1857 }
 0x5d7   :  { %v1233_v2 = vadd.f32 %v1232_v16, %v1231_v54 }
 0x5d9   :  { %1859 = vtanh.f32 %v1233_v2  ;;  %v1241_v40 = vsub.f32 %v1233_v2, %v2539_v6 }
 0x5db   :  { %v1242_v26 = vmul.f32 %v1241_v40, %v412_v45 }
 0x5dd   :  { %v2598_v27 = vadd.f32 %v1242_v26, %v2539_v6  ;;  %v2677_v6 = vld [vmem:[%s2859_s3 + $0x6c] ss:$16 sps:$4 sm:$0xff]  }
 0x5e3   :  { %v1860_v19 = vpop.eup %1859 }
 0x5e4   :  { %v1235_v21 = vmul.f32 %v1860_v19, %v1858_v28 }
 0x5e6   :  { %v1238_v31 = vsub.f32 %v1235_v21, %v2543_v1 }
 0x5e8   :  { %v1239_v34 = vmul.f32 %v1238_v31, %v412_v45 }
 0x5ea   :  { %v2602_v24 = vadd.f32 %v1239_v34, %v2543_v1  ;;  %v2713_v1 = vld [vmem:[%s2859_s3 + $0x88] ss:$16 sps:$4 sm:$0xff]  }
 0x5ec   :  { %v1249_v20 = vpack.c.bf16 %v2602_v24, %v2602_v24 }
 0x5ee   :  { %1283 = vmatmul.mubr.bf16.vlgmr.msra.gmra.mrb[36].mxu0 %v1249_v20  ;;  %1324 = vmatmul.mubr.bf16.vlgmr.msra.gmra.mrb[36].mxu1 %v1249_v20 }
 0x5ef   :  { %1375 = vmatpush1.bf16.msra.mxu0 %v2609_v35  ;;  %1416 = vmatpush1.bf16.msra.mxu1 %v2615_v36 }
 0x5f0   :  { %1376 = vmatprep.subr.bf16.mxu0 %v2621_v12  ;;  %1417 = vmatprep.subr.bf16.mxu1 %v2627_v7 }
 0x5f1   :  { %1406 = vmatprep.mubr.bf16.mxu0 %v2888_v60  ;;  %1447 = vmatprep.mubr.bf16.mxu1 %v2888_v60 }
 0x5f3   :  { %1377 = vmatpush1.bf16.msra.mxu0 %v2635_v22  ;;  %1418 = vmatpush1.bf16.msra.mxu1 %v2641_v48 }
 0x5f4   :  { %1378 = vmatprep.subr.bf16.mxu0 %v2647_v49  ;;  %1419 = vmatprep.subr.bf16.mxu1 %v2653_v25 }
 0x5f7   :  { %1379 = vmatpush1.bf16.msra.mxu0 %v2659_v23  ;;  %1420 = vmatpush1.bf16.msra.mxu1 %v2665_v51 }
 0x5f8   :  { %1380 = vmatprep.subr.bf16.mxu0 %v2671_v55  ;;  %1421 = vmatprep.subr.bf16.mxu1 %v2677_v6 }
 0x5fb   :  { %1381 = vmatpush1.bf16.msra.mxu0 %v2683_v63  ;;  %1422 = vmatpush1.bf16.msra.mxu1 %v2689_v18 }
 0x5fc   :  { %1382 = vmatprep.subr.bf16.mxu0 %v2695_v50  ;;  %1423 = vmatprep.subr.bf16.mxu1 %v2701_v3 }
 0x5ff   :  { %1383 = vmatpush1.bf16.msra.mxu0 %v2707_v17  ;;  %1424 = vmatpush1.bf16.msra.mxu1 %v2713_v1 }
 0x600   :  { %1384 = vmatprep.subr.bf16.mxu0 %v2719_v0  ;;  %1425 = vmatprep.subr.bf16.mxu1 %v2725_v32 }
 0x603   :  { %1385 = vmatpush1.bf16.msra.mxu0 %v2731_v33  ;;  %1426 = vmatpush1.bf16.msra.mxu1 %v2737_v37 }
 0x604   :  { %1386 = vmatprep.subr.bf16.mxu0 %v2743_v38  ;;  %1427 = vmatprep.subr.bf16.mxu1 %v2749_v41 }
 0x607   :  { %1387 = vmatpush1.bf16.msra.mxu0 %v2755_v42  ;;  %1428 = vmatpush1.bf16.msra.mxu1 %v2761_v43 }
 0x608   :  { %1388 = vmatprep.subr.bf16.mxu0 %v2767_v44  ;;  %1429 = vmatprep.subr.bf16.mxu1 %v2773_v46 }
 0x60b   :  { %1389 = vmatpush1.bf16.msra.mxu0 %v2779_v47  ;;  %1430 = vmatpush1.bf16.msra.mxu1 %v2785_v52 }
 0x60c   :  { %1498 = vmatprep.subr.bf16.mxu0 %v2582_v29  ;;  %1539 = vmatprep.subr.bf16.mxu1 %v2588_v30 }
 0x6c1   :  { %v1284_v53 = vpop.f32.mrb[36].mxu0  ;;  %v1325_v56 = vpop.f32.mrb[36].mxu1 }
 0x6c2   :  { %v1332_v58 = vadd.f32 %v1284_v53, %v2899_v57  ;;  %v1334_v61 = vadd.f32 %v1325_v56, %v2900_v59  ;;  %v1286_v62 = vpop.f32.mrb[37].mxu0  ;;  %v1327_v4 = vpop.f32.mrb[37].mxu1 }
 0x6c3   :  { %v1333_v8 = vadd.f32 %v1286_v62, %v2901_v5  ;;  %v1335_v10 = vadd.f32 %v1327_v4, %v2902_v9  ;;  %v1288_v11 = vpop.f32.mrb[38].mxu0  ;;  %v1329_v13 = vpop.f32.mrb[38].mxu1 }
 0x6c4   :  { %v1704_v14 = vmul.f32 -1.442695, %v1332_v58  ;;  %v1289_v15 = vpop.f32.mrb[39].mxu0  ;;  %v1330_v16 = vpop.f32.mrb[39].mxu1 }
 0x6c5   :  { %v1705_v29 = vmul.f32 -1.442695, %v1333_v8  ;;  %v1706_v30 = vmul.f32 -1.442695, %v1335_v10  ;;  %v417_v56 = vpop.permute.xlu1 %416 }
 0x6c6   :  { %1861 = vpow2.f32 %v1704_v14 }
 0x6c7   :  { %1863 = vpow2.f32 %v1705_v29 }
 0x6c8   :  { %1865 = vpow2.f32 %v1706_v30 }
 0x6c9   :  { %1867 = vtanh.f32 %v1334_v61 }
 0x6d0   :  { %v1862_v39 = vpop.eup %1861 }
 0x6d1   :  { %v1864_v54 = vpop.eup %1863  ;;  %v1339_v2 = vadd.f32 1.0, %v1862_v39 }
 0x6d2   :  { %v1345_v40 = vadd.f32 1.0, %v1864_v54  ;;  %v1866_v45 = vpop.eup %1865 }
 0x6d3   :  { %1869 = vrcp.f32 %v1339_v2  ;;  %v1868_v26 = vpop.eup %1867  ;;  %v1352_v31 = vadd.f32 1.0, %v1866_v45 }
 0x6d4   :  { %1871 = vrcp.f32 %v1345_v40  ;;  %v2907_v40 = vld [vmem:[#allocation26_spill] sm:$0xff] }
 0x6d5   :  { %1873 = vrcp.f32 %v1352_v31  ;;  %v2909_v31 = vld [vmem:[#allocation28_spill] sm:$0xff] }
 0x6dd   :  { %v1870_v28 = vpop.eup %1869 }
 0x6de   :  { %v1872_v19 = vpop.eup %1871  ;;  %v1356_v21 = vmul.f32 %v1870_v28, %v1868_v26  ;;  %v2908_v26 = vld [vmem:[#allocation27_spill] sm:$0xff] }
 0x6df   :  { %v1355_v34 = vmul.f32 %v1872_v19, %v2598_v27  ;;  %v1874_v59 = vpop.eup %1873 }
 0x6e1   :  { %v1357_v20 = vadd.f32 %v1356_v21, %v1355_v34 }
 0x6e3   :  { %1875 = vtanh.f32 %v1357_v20  ;;  %v1365_v53 = vsub.f32 %v1357_v20, %v2598_v27  ;;  %v2910_v20 = vld [vmem:[#allocation29_spill] sm:$0xff] }
 0x6e5   :  { %v1366_v57 = vmul.f32 %v1365_v53, %v417_v56 }
 0x6e7   :  { %v2797_v58 = vadd.f32 %v1366_v57, %v2598_v27 }
 0x6ed   :  { %v1876_v61 = vpop.eup %1875 }
 0x6ee   :  { %v1359_v62 = vmul.f32 %v1876_v61, %v1874_v59 }
 0x6f0   :  { %v1362_v4 = vsub.f32 %v1359_v62, %v2602_v24 }
 0x6f2   :  { %v1363_v5 = vmul.f32 %v1362_v4, %v417_v56 }
 0x6f4   :  { %v2801_v8 = vadd.f32 %v1363_v5, %v2602_v24  ;;  %v2903_v24 = vld [vmem:[#allocation22_spill] sm:$0xff] }
 0x6f6   :  { %v1373_v9 = vpack.c.bf16 %v2801_v8, %v2801_v8 }
 0x6f8   :  { %1407 = vmatmul.mubr.bf16.vlgmr.msra.gmra.mrb[40].mxu0 %v1373_v9  ;;  %1448 = vmatmul.mubr.bf16.vlgmr.msra.gmra.mrb[40].mxu1 %v1373_v9 }
 0x6f9   :  { %1499 = vmatpush1.bf16.msra.mxu0 %v2609_v35  ;;  %1540 = vmatpush1.bf16.msra.mxu1 %v2615_v36  ;;  %v2904_v36 = vld [vmem:[#allocation23_spill] sm:$0xff] }
 0x6fa   :  { %1500 = vmatprep.subr.bf16.mxu0 %v2621_v12  ;;  %1541 = vmatprep.subr.bf16.mxu1 %v2627_v7 }
 0x6fb   :  { %1530 = vmatprep.mubr.bf16.mxu0 %v2888_v60  ;;  %1571 = vmatprep.mubr.bf16.mxu1 %v2888_v60 }
 0x6fd   :  { %1501 = vmatpush1.bf16.msra.mxu0 %v2635_v22  ;;  %1542 = vmatpush1.bf16.msra.mxu1 %v2641_v48  ;;  %v2905_v48 = vld [vmem:[#allocation24_spill] sm:$0xff] }
 0x6fe   :  { %1502 = vmatprep.subr.bf16.mxu0 %v2647_v49  ;;  %1543 = vmatprep.subr.bf16.mxu1 %v2653_v25  ;;  %v2906_v25 = vld [vmem:[#allocation25_spill] sm:$0xff] }
 0x701   :  { %1503 = vmatpush1.bf16.msra.mxu0 %v2659_v23  ;;  %1544 = vmatpush1.bf16.msra.mxu1 %v2665_v51 }
 0x702   :  { %1504 = vmatprep.subr.bf16.mxu0 %v2671_v55  ;;  %1545 = vmatprep.subr.bf16.mxu1 %v2677_v6 }
 0x705   :  { %1505 = vmatpush1.bf16.msra.mxu0 %v2683_v63  ;;  %1546 = vmatpush1.bf16.msra.mxu1 %v2689_v18 }
 0x706   :  { %1506 = vmatprep.subr.bf16.mxu0 %v2695_v50  ;;  %1547 = vmatprep.subr.bf16.mxu1 %v2701_v3 }
 0x709   :  { %1507 = vmatpush1.bf16.msra.mxu0 %v2707_v17  ;;  %1548 = vmatpush1.bf16.msra.mxu1 %v2713_v1 }
 0x70a   :  { %1508 = vmatprep.subr.bf16.mxu0 %v2719_v0  ;;  %1549 = vmatprep.subr.bf16.mxu1 %v2725_v32 }
 0x70d   :  { %1509 = vmatpush1.bf16.msra.mxu0 %v2731_v33  ;;  %1550 = vmatpush1.bf16.msra.mxu1 %v2737_v37 }
 0x70e   :  { %1510 = vmatprep.subr.bf16.mxu0 %v2743_v38  ;;  %1551 = vmatprep.subr.bf16.mxu1 %v2749_v41 }
 0x711   :  { %1511 = vmatpush1.bf16.msra.mxu0 %v2755_v42  ;;  %1552 = vmatpush1.bf16.msra.mxu1 %v2761_v43 }
 0x712   :  { %1512 = vmatprep.subr.bf16.mxu0 %v2767_v44  ;;  %1553 = vmatprep.subr.bf16.mxu1 %v2773_v46 }
 0x715   :  { %1513 = vmatpush1.bf16.msra.mxu0 %v2779_v47  ;;  %1554 = vmatpush1.bf16.msra.mxu1 %v2785_v52  ;;  %v422_v52 = vpop.permute.xlu0 %421 }
 0x7cb   :  { %v1408_v60 = vpop.f32.mrb[40].mxu0  ;;  %v1449_v27 = vpop.f32.mrb[40].mxu1 }
 0x7cc   :  { %v1456_v35 = vadd.f32 %v1408_v60, %v2903_v24  ;;  %v1458_v12 = vadd.f32 %v1449_v27, %v2904_v36  ;;  %v1410_v7 = vpop.f32.mrb[41].mxu0  ;;  %v1451_v22 = vpop.f32.mrb[41].mxu1 }
 0x7cd   :  { %v1457_v49 = vadd.f32 %v1410_v7, %v2905_v48  ;;  %v1459_v23 = vadd.f32 %v1451_v22, %v2906_v25  ;;  %v1412_v51 = vpop.f32.mrb[42].mxu0  ;;  %v1453_v55 = vpop.f32.mrb[42].mxu1 }
 0x7ce   :  { %v1707_v6 = vmul.f32 -1.442695, %v1456_v35  ;;  %v1413_v63 = vpop.f32.mrb[43].mxu0  ;;  %v1454_v18 = vpop.f32.mrb[43].mxu1 }
 0x7cf   :  { %v1708_v50 = vmul.f32 -1.442695, %v1457_v49  ;;  %v1709_v3 = vmul.f32 -1.442695, %v1459_v23  ;;  %v427_v55 = vpop.permute.xlu1 %426  ;;  %v1713_v63 = vld [vmem:[%s2861_s5] ss:$0 sm:$0xff] }
 0x7d0   :  { %1877 = vpow2.f32 %v1707_v6 }
 0x7d1   :  { %1879 = vpow2.f32 %v1708_v50 }
 0x7d2   :  { %1881 = vpow2.f32 %v1709_v3  ;;  %v1714_v3 = vld [vmem:[#allocation4] ss:$0 sm:$0xff] }
 0x7d3   :  { %1883 = vtanh.f32 %v1458_v12 }
 0x7da   :  { %v1878_v17 = vpop.eup %1877 }
 0x7db   :  { %v1880_v1 = vpop.eup %1879  ;;  %v1463_v0 = vadd.f32 1.0, %v1878_v17 }
 0x7dc   :  { %v1469_v32 = vadd.f32 1.0, %v1880_v1  ;;  %v1882_v33 = vpop.eup %1881 }
 0x7dd   :  { %1885 = vrcp.f32 %v1463_v0  ;;  %v1884_v37 = vpop.eup %1883  ;;  %v1476_v43 = vadd.f32 1.0, %v1882_v33 }
 0x7de   :  { %1887 = vrcp.f32 %v1469_v32 }
 0x7df   :  { %1889 = vrcp.f32 %v1476_v43 }
 0x7e7   :  { %v1886_v38 = vpop.eup %1885 }
 0x7e8   :  { %v1888_v41 = vpop.eup %1887  ;;  %v1480_v42 = vmul.f32 %v1886_v38, %v1884_v37 }
 0x7e9   :  { %v1479_v44 = vmul.f32 %v1888_v41, %v2797_v58  ;;  %v1890_v13 = vpop.eup %1889 }
 0x7eb   :  { %v1481_v46 = vadd.f32 %v1480_v42, %v1479_v44 }
 0x7ed   :  { %1891 = vtanh.f32 %v1481_v46  ;;  %v1489_v47 = vsub.f32 %v1481_v46, %v2797_v58 }
 0x7ef   :  { %v1490_v10 = vmul.f32 %v1489_v47, %v422_v52 }
 0x7f1   :  { %v1491_v11 = vadd.f32 %v1490_v10, %v2797_v58 }
 0x7f7   :  { %v1892_v14 = vpop.eup %1891 }
 0x7f8   :  { %v1483_v15 = vmul.f32 %v1892_v14, %v1890_v13 }
 0x7fa   :  { %v1486_v16 = vsub.f32 %v1483_v15, %v2801_v8 }
 0x7fc   :  { %v1487_v29 = vmul.f32 %v1486_v16, %v422_v52 }
 0x7fe   :  { %v1488_v30 = vadd.f32 %v1487_v29, %v2801_v8 }
 0x800   :  { %v1497_v39 = vpack.c.bf16 %v1488_v30, %v1488_v30 }
 0x802   :  { %1531 = vmatmul.mubr.bf16.vlgmr.msra.gmra.mrb[44].mxu0 %v1497_v39  ;;  %1572 = vmatmul.mubr.bf16.vlgmr.msra.gmra.mrb[44].mxu1 %v1497_v39 }
 0x8d5   :  { %v1532_v54 = vpop.f32.mrb[44].mxu0  ;;  %v1573_v2 = vpop.f32.mrb[44].mxu1 }
 0x8d6   :  { %v1580_v45 = vadd.f32 %v1532_v54, %v2907_v40  ;;  %v1582_v28 = vadd.f32 %v1573_v2, %v2908_v26  ;;  %v1534_v19 = vpop.f32.mrb[45].mxu0  ;;  %v1575_v21 = vpop.f32.mrb[45].mxu1 }
 0x8d7   :  { %v1581_v34 = vadd.f32 %v1534_v19, %v2909_v31  ;;  %v1583_v53 = vadd.f32 %v1575_v21, %v2910_v20  ;;  %v1536_v56 = vpop.f32.mrb[46].mxu0  ;;  %v1577_v57 = vpop.f32.mrb[46].mxu1 }
 0x8d8   :  { %v1710_v58 = vmul.f32 -1.442695, %v1580_v45  ;;  %v1537_v59 = vpop.f32.mrb[47].mxu0  ;;  %v1578_v61 = vpop.f32.mrb[47].mxu1 }
 0x8d9   :  { %v1711_v62 = vmul.f32 -1.442695, %v1581_v34  ;;  %v1712_v4 = vmul.f32 -1.442695, %v1583_v53 }
 0x8da   :  { %1893 = vpow2.f32 %v1710_v58 }
 0x8db   :  { %1895 = vpow2.f32 %v1711_v62 }
 0x8dc   :  { %1897 = vpow2.f32 %v1712_v4 }
 0x8dd   :  { %1899 = vtanh.f32 %v1582_v28 }
 0x8e4   :  { %v1894_v5 = vpop.eup %1893 }
 0x8e5   :  { %v1896_v8 = vpop.eup %1895  ;;  %v1587_v9 = vadd.f32 1.0, %v1894_v5 }
 0x8e6   :  { %v1593_v60 = vadd.f32 1.0, %v1896_v8  ;;  %v1898_v27 = vpop.eup %1897 }
 0x8e7   :  { %1901 = vrcp.f32 %v1587_v9  ;;  %v1900_v24 = vpop.eup %1899  ;;  %v1600_v7 = vadd.f32 1.0, %v1898_v27 }
 0x8e8   :  { %1903 = vrcp.f32 %v1593_v60 }
 0x8e9   :  { %1905 = vrcp.f32 %v1600_v7 }
 0x8f1   :  { %v1902_v35 = vpop.eup %1901 }
 0x8f2   :  { %v1904_v36 = vpop.eup %1903  ;;  %v1604_v12 = vmul.f32 %v1902_v35, %v1900_v24 }
 0x8f3   :  { %v1603_v22 = vmul.f32 %v1904_v36, %v1491_v11  ;;  %v1906_v49 = vpop.eup %1905 }
 0x8f5   :  { %v1605_v48 = vadd.f32 %v1604_v12, %v1603_v22 }
 0x8f7   :  { %1907 = vtanh.f32 %v1605_v48 }
 0x901   :  { %v1908_v25 = vpop.eup %1907 }
 0x902   :  { %v1607_v23 = vmul.f32 %v1908_v25, %v1906_v49 }
 0x904   :  { %v1610_v51 = vsub.f32 %v1607_v23, %v1488_v30 }
 0x906   :  { %v1611_v6 = vmul.f32 %v1610_v51, %v427_v55 }
 0x908   :  { %v1612_v18 = vadd.f32 %v1611_v6, %v1488_v30 }
 0x90a   :  { %v1620_v50 = vmul.f32 %v1713_v63, %v1612_v18 }
 0x90c   :  { %1621 = vadd.xlane.f32.xlu0 %v1620_v50 }
 0x999   :  { %v1622_v17 = vpop.xlane.xlu0 %1621 }
 0x99a   :  { %v1630_v1 = vadd.f32 %v1714_v3, %v1622_v17 }
 0x99c   :  { %v1631_v0 = vmax.f32 %v1630_v1, 0.0 }
 0x99e   :  { %1633 = vst.msk [vmem:[%s2863_s7] sm:$0xff] %vm1632_vm2, %v1631_v0 }
 0x99f   :  { %1638 = vsyncpa [#allocation6], 1 }

</bundles_post_ra>
